<compile_context>
chip_gen: v6e
topology: v6e:2x2x1
jax: 0.10.0
libtpu: 0.0.40
codegen_flags: <defaults>
</compile_context>

<pallas_src>
import math
import functools

import jax
import jax.numpy as jnp
from jax.experimental import pallas as pl
from jax.experimental.pallas import tpu as pltpu

_EPS = 1e-5


# ----------------------------------------------------------------- helpers --

def _round_up(n, m):
    return ((n + m - 1) // m) * m


def _choose_layout(n, max_tile, max_slabs=2):
    """Pick (tile, n_slabs, steps_per_slab, padded_rows) for a row-tiled pass.

    `n_slabs` becomes a leading "parallel" grid axis so the two v7x TensorCores
    each reduce their own half of the rows into a private stats slab."""
    tile = min(max_tile, _round_up(n, 8))
    steps = -(-n // tile)                       # cdiv
    if steps >= max_slabs:
        slabs = max_slabs
        steps = _round_up(steps, slabs)
    else:
        slabs = 1
    return tile, slabs, steps // slabs, steps * tile


def _pad_rows(a, rows):
    pad = rows - a.shape[0]
    if pad == 0:
        return a
    return jnp.pad(a, [(0, pad)] + [(0, 0)] * (a.ndim - 1))


def _fold_bn(stats, n_valid, gamma, beta, eps=_EPS):
    """Fold global batch statistics (sum, sum-of-squares of x@W, bias-free) into a
    per-column affine: y_bn = (x@W) * scale + shift.  The Linear bias cancels
    through BatchNorm so it never appears."""
    mean = stats[0] / float(n_valid)
    var = jnp.maximum(stats[1] / float(n_valid) - mean * mean, 0.0)
    scale = gamma * jax.lax.rsqrt(var + eps)
    shift = beta - mean * scale
    return scale.reshape(1, -1), shift.reshape(1, -1)


# ----------------------------------------------------------------- kernels --

def _make_lin_stats_kernel(emit_y):
    """y = x @ W (bf16 MXU, f32 accumulation, no bias); accumulate per-column
    sum / sum-of-squares into a resident (1, 2, C) stats block (one slab per
    "parallel" grid index).  Zero-padded rows contribute exactly 0."""

    def kernel(x_ref, w_ref, *out_refs):
        if emit_y:
            y_ref, stats_ref = out_refs
        else:
            (stats_ref,) = out_refs

        i = pl.program_id(1)                     # reduction ("arbitrary") axis

        y = jnp.dot(x_ref[...], w_ref[...], preferred_element_type=jnp.float32)
        if emit_y:
            y_ref[...] = y

        @pl.when(i == 0)
        def _init():
            stats_ref[...] = jnp.zeros_like(stats_ref)

        s = jnp.sum(y, axis=0, keepdims=True)            # (1, C)
        ss = jnp.sum(y * y, axis=0, keepdims=True)       # (1, C)
        stats_ref[...] += jnp.concatenate([s, ss], axis=0)[None]   # single (1,2,C) RMW

    return kernel


def linear_no_bias_with_stats(x_bf16, W_bf16, *, tile, slabs, steps, emit_y):
    """Row-tiled bias-free Linear with global-BN statistics accumulation.

    grid = (slabs, steps): slab axis is "parallel" (per-core partial stats),
    row axis is "arbitrary" (stats block revisited / accumulated)."""
    rows, cin = x_bf16.shape
    cout = W_bf16.shape[1]
    row_map = lambda c, i: (c * steps + i, 0)
    bcast = lambda c, i: (0, 0)

    out_shape = []
    out_specs = []
    if emit_y:
        out_shape.append(jax.ShapeDtypeStruct((rows, cout), jnp.float32))
        out_specs.append(pl.BlockSpec((tile, cout), row_map))
    out_shape.append(jax.ShapeDtypeStruct((slabs, 2, cout), jnp.float32))
    out_specs.append(pl.BlockSpec((1, 2, cout), lambda c, i: (c, 0, 0)))

    outs = pl.pallas_call(
        _make_lin_stats_kernel(emit_y),
        out_shape=tuple(out_shape),
        grid=(slabs, steps),
        in_specs=[
            pl.BlockSpec((tile, cin), row_map),
            pl.BlockSpec((cin, cout), bcast),
        ],
        out_specs=tuple(out_specs),
        compiler_params=pltpu.CompilerParams(
            dimension_semantics=("parallel", "arbitrary")),
    )(x_bf16, W_bf16)

    if emit_y:
        y, stats = outs
    else:
        (stats,) = outs
    stats = jnp.sum(stats, axis=0)               # combine per-slab partials -> (2, C)
    return (y, stats) if emit_y else stats


def _fused_decode_kernel(x_ref, it_ref, w_ref, scale_ref, shift_ref, o_ref):
    """Fused decode tile: Lin(out,out) on the MXU + folded-BN affine + ReLU +
    residual add of the (pre-computed, bf16) interpolated coarse features."""
    y = jnp.dot(x_ref[...], w_ref[...], preferred_element_type=jnp.float32)
    y = jnp.maximum(y * scale_ref[...] + shift_ref[...], 0.0)
    o_ref[...] = y + it_ref[...].astype(jnp.float32)


def fused_decode(x_bf16, interp_bf16, W_bf16, scale, shift, *, tile):
    rows, cout = x_bf16.shape
    row_map = lambda i: (i, 0)
    bcast = lambda i: (0, 0)
    return pl.pallas_call(
        _fused_decode_kernel,
        out_shape=jax.ShapeDtypeStruct((rows, cout), jnp.float32),
        grid=(rows // tile,),
        in_specs=[
            pl.BlockSpec((tile, cout), row_map),   # x (skip features, bf16)
            pl.BlockSpec((tile, cout), row_map),   # interpolated coarse features (bf16)
            pl.BlockSpec((cout, cout), bcast),     # W (bf16)
            pl.BlockSpec((1, cout), bcast),        # folded BN scale
            pl.BlockSpec((1, cout), bcast),        # folded BN shift
        ],
        out_specs=pl.BlockSpec((tile, cout), row_map),
        compiler_params=pltpu.CompilerParams(dimension_semantics=("parallel",)),
    )(x_bf16, interp_bf16, W_bf16, scale, shift)


# ------------------------------------------------------------ TransitionUp --

def transition_up(params, x, x_sub, pos, pos_sub, *, tile=1024):
    """TransitionUp.forward(x, x_sub, pos, pos_sub)  (batch=None, train-mode BN)."""
    n, cout = x.shape
    m, _ = x_sub.shape

    # --- sub branch: Linear (bias cancels through BN) + global BN stats -----
    t_s, slabs_s, steps_s, rows_s = _choose_layout(m, tile)
    xs_bf = _pad_rows(x_sub.astype(jnp.bfloat16), rows_s)
    Ws_bf = params['sub_W'].astype(jnp.bfloat16)
    y_sub, sub_stats = linear_no_bias_with_stats(
        xs_bf, Ws_bf, tile=t_s, slabs=slabs_s, steps=steps_s, emit_y=True)
    s_scale, s_shift = _fold_bn(sub_stats, m, params['sub_bn'][0], params['sub_bn'][1])
    # BN + ReLU applied ONCE on the small (M-row) side, before the gather.
    xs_bn = jnp.maximum(y_sub[:m] * s_scale + s_shift, 0.0)

    # --- main branch: global BN stats (y recomputed from bf16 x in the fused
    #     pass; cheaper in bytes than a y round trip) ------------------------
    t_m, slabs_m, steps_m, rows_m = _choose_layout(n, tile)
    x_bf = _pad_rows(x.astype(jnp.bfloat16), rows_m)
    W_bf = params['W'].astype(jnp.bfloat16)
    main_stats = linear_no_bias_with_stats(
        x_bf, W_bf, tile=t_m, slabs=slabs_m, steps=steps_m, emit_y=False)
    m_scale, m_shift = _fold_bn(main_stats, n, params['bn'][0], params['bn'][1])

    # --- knn_interpolate: neighbour search, gather and weighted sum (XLA) ---
    # TODO(synk): top_k + data-dependent row gather are not rectangular tiles.
    pos_p = _pad_rows(pos, rows_m)
    d2 = jnp.sum((pos_p[:, None, :] - pos_sub[None, :, :]) ** 2, axis=-1)
    neg_d2, nbr = jax.lax.top_k(-d2, 3)                    # 3 nearest coarse pts
    w = 1.0 / jnp.maximum(-neg_d2, 1e-16)
    w = w / jnp.sum(w, axis=1, keepdims=True)              # pre-normalized weights
    interp = jnp.sum(xs_bn[nbr] * w[:, :, None], axis=1).astype(jnp.bfloat16)

    # --- fused decode: Lin + folded BN affine + ReLU + residual add ---------
    out = fused_decode(x_bf, interp, W_bf, m_scale, m_shift, tile=t_m)
    return out[:n]


# --------------------------------------------------------------- reference --

def reference_transition_up(p, x, x_sub, pos, pos_sub, eps=_EPS):
    def mlp(v, W, b, g, be):
        y = jnp.dot(v.astype(jnp.bfloat16), W.astype(jnp.bfloat16),
                    preferred_element_type=jnp.float32) + b
        mu = jnp.mean(y, axis=0, keepdims=True)
        var = jnp.mean((y - mu) ** 2, axis=0, keepdims=True)
        return jnp.maximum((y - mu) * jax.lax.rsqrt(var + eps) * g + be, 0.0)

    xs = mlp(x_sub, p['sub_W'], p['sub_b'], p['sub_bn'][0], p['sub_bn'][1])
    d2 = jnp.sum((pos[:, None, :] - pos_sub[None, :, :]) ** 2, axis=-1)
    neg_d2, nbr = jax.lax.top_k(-d2, 3)
    w = 1.0 / jnp.maximum(-neg_d2, 1e-16)
    interp = (jnp.sum(xs[nbr] * w[:, :, None], axis=1)
              / jnp.sum(w, axis=1, keepdims=True))
    return mlp(x, p['W'], p['b'], p['bn'][0], p['bn'][1]) + interp


# -------------------------------------------------------------- parameters --

def init_transition_up_params(key, in_channels, out_channels):
    def linear(k, cin, cout):
        kw, kb = jax.random.split(k)
        bound = 1.0 / math.sqrt(cin)
        W = jax.random.uniform(kw, (cin, cout), jnp.float32, -bound, bound)
        b = jax.random.uniform(kb, (cout,), jnp.float32, -bound, bound)
        return W, b

    k0, k1 = jax.random.split(key)
    p = {}
    p['sub_W'], p['sub_b'] = linear(k0, in_channels, out_channels)
    p['sub_bn'] = (jnp.ones((out_channels,), jnp.float32),
                   jnp.zeros((out_channels,), jnp.float32))
    p['W'], p['b'] = linear(k1, out_channels, out_channels)
    p['bn'] = (jnp.ones((out_channels,), jnp.float32),
               jnp.zeros((out_channels,), jnp.float32))
    return p


# -------------------------------------------------------------------- main --

if __name__ == "__main__":
    IN_CH, OUT_CH = 64, 128          # coarse / fine feature widths
    N, M = 512, 128                  # fine / coarse point counts

    key = jax.random.PRNGKey(0)
    kx, kxs, kp, kps, kw = jax.random.split(key, 5)
    x = jax.random.normal(kx, (N, OUT_CH), jnp.float32)      # skip features
    x_sub = jax.random.normal(kxs, (M, IN_CH), jnp.float32)  # coarse features
    pos = jax.random.normal(kp, (N, 3), jnp.float32)
    pos_sub = pos[jax.random.permutation(kps, N)[:M]]        # coarse positions
    params = init_transition_up_params(kw, IN_CH, OUT_CH)

    # Small tile for the toy shapes so both the 2-slab (parallel) stats path and
    # the multi-step row grid are exercised; use the default (1024) at real sizes.
    fwd = jax.jit(functools.partial(transition_up, tile=128))
    out = fwd(params, x, x_sub, pos, pos_sub)
    jax.block_until_ready(out)

    assert out.shape == (N, OUT_CH)
    assert bool(jnp.all(jnp.isfinite(out)))

    ref = reference_transition_up(params, x, x_sub, pos, pos_sub)
    err = float(jnp.max(jnp.abs(out - ref)))
    assert err < 2e-2, f"max |out - ref| = {err}"
    print("KERNEL_OK")
</pallas_src>

<mosaic_0001>
module attributes {stable_mosaic.version = 11 : i64} {
  func.func @kernel(%arg0: i32, %arg1: i32, %arg2: memref<128x64xbf16, #tpu.memory_space<vmem>>, %arg3: memref<64x128xbf16, #tpu.memory_space<vmem>>, %arg4: memref<128x128xf32, #tpu.memory_space<vmem>>, %arg5: memref<1x2x128xf32, #tpu.memory_space<vmem>>) attributes {dimension_semantics = [#tpu.dimension_semantics<parallel>, #tpu.dimension_semantics<arbitrary>], iteration_bounds = array<i64: 1, 1>, scalar_prefetch = 0 : i64, scratch_operands = 0 : i64, tpu.core_type = #tpu.core_type<tc>, window_params = [{transform_indices = @transform_0, window_bounds = array<i64: 128, 64>}, {pipeline_mode = #tpu.pipeline_mode<synchronous>, transform_indices = @transform_1, window_bounds = array<i64: 64, 128>}, {transform_indices = @transform_2, window_bounds = array<i64: 128, 128>}, {transform_indices = @transform_3, window_bounds = array<i64: 1, 2, 128>}]} {
    %c0 = arith.constant 0 : index
    %c0_0 = arith.constant 0 : index
    %0 = vector.load %arg2[%c0, %c0_0] : memref<128x64xbf16, #tpu.memory_space<vmem>>, vector<128x64xbf16>
    %c0_1 = arith.constant 0 : index
    %c0_2 = arith.constant 0 : index
    %1 = vector.load %arg3[%c0_1, %c0_2] : memref<64x128xbf16, #tpu.memory_space<vmem>>, vector<64x128xbf16>
    %cst = arith.constant dense<0.000000e+00> : vector<128x128xf32>
    %2 = tpu.matmul %0, %1, %cst {dimension_numbers = #tpu.dot_dimension_numbers<[1], [0], [0], [1], [0, 0, 1, 1], [], []>} : vector<128x64xbf16>, vector<64x128xbf16>, vector<128x128xf32> -> vector<128x128xf32>
    %c0_3 = arith.constant 0 : index
    %c0_4 = arith.constant 0 : index
    %3 = vector.load %arg4[%c0_3, %c0_4] : memref<128x128xf32, #tpu.memory_space<vmem>>, vector<128x128xf32>
    tpu.vector_store %arg4[%c0_3, %c0_4], %2 {strides = array<i32>} : memref<128x128xf32, #tpu.memory_space<vmem>>, vector<128x128xf32>,
    %c0_i32 = arith.constant 0 : i32
    %4 = arith.cmpi eq, %arg1, %c0_i32 : i32
    %5 = arith.extui %4 : i1 to i32
    %c0_i32_5 = arith.constant 0 : i32
    %6 = arith.cmpi ne, %5, %c0_i32_5 : i32
    scf.if %6 {
      %cst_14 = arith.constant 0.000000e+00 : f32
      %17 = vector.broadcast %cst_14 : f32 to vector<1x2x128xf32>
      %c0_15 = arith.constant 0 : index
      %c0_16 = arith.constant 0 : index
      %c0_17 = arith.constant 0 : index
      %18 = vector.load %arg5[%c0_15, %c0_16, %c0_17] : memref<1x2x128xf32, #tpu.memory_space<vmem>>, vector<1x2x128xf32>
      tpu.vector_store %arg5[%c0_15, %c0_16, %c0_17], %17 {strides = array<i32>} : memref<1x2x128xf32, #tpu.memory_space<vmem>>, vector<1x2x128xf32>,
    } else {
    }
    %cst_6 = arith.constant dense<0.000000e+00> : vector<128xf32>
    %7 = vector.multi_reduction <add>, %2, %cst_6 [0] : vector<128x128xf32> to vector<128xf32>
    %8 = vector.shape_cast %7 : vector<128xf32> to vector<1x128xf32>
    %9 = arith.mulf %2, %2 : vector<128x128xf32>
    %cst_7 = arith.constant dense<0.000000e+00> : vector<128xf32>
    %10 = vector.multi_reduction <add>, %9, %cst_7 [0] : vector<128x128xf32> to vector<128xf32>
    %11 = vector.shape_cast %10 : vector<128xf32> to vector<1x128xf32>
    %c0_8 = arith.constant 0 : index
    %c0_9 = arith.constant 0 : index
    %c0_10 = arith.constant 0 : index
    %12 = vector.load %arg5[%c0_8, %c0_9, %c0_10] : memref<1x2x128xf32, #tpu.memory_space<vmem>>, vector<1x2x128xf32>
    %13 = tpu.concatenate %8, %11 in 0 : vector<1x128xf32>, vector<1x128xf32> -> vector<2x128xf32>
    %14 = vector.shape_cast %13 : vector<2x128xf32> to vector<1x2x128xf32>
    %15 = arith.addf %12, %14 : vector<1x2x128xf32>
    %c0_11 = arith.constant 0 : index
    %c0_12 = arith.constant 0 : index
    %c0_13 = arith.constant 0 : index
    %16 = vector.load %arg5[%c0_11, %c0_12, %c0_13] : memref<1x2x128xf32, #tpu.memory_space<vmem>>, vector<1x2x128xf32>
    tpu.vector_store %arg5[%c0_11, %c0_12, %c0_13], %15 {strides = array<i32>} : memref<1x2x128xf32, #tpu.memory_space<vmem>>, vector<1x2x128xf32>,
    return
  }
  func.func @transform_0(%arg0: i32, %arg1: i32) -> (i32, i32) {
    %c1_i32 = arith.constant 1 : i32
    %0 = arith.muli %arg0, %c1_i32 : i32
    %1 = arith.addi %0, %arg1 : i32
    %c0_i32 = arith.constant 0 : i32
    %c0_i32_0 = arith.constant 0 : i32
    return %1, %c0_i32 : i32, i32
  }
  func.func @transform_1(%arg0: i32, %arg1: i32) -> (i32, i32) {
    %c0_i32 = arith.constant 0 : i32
    %c0_i32_0 = arith.constant 0 : i32
    %c0_i32_1 = arith.constant 0 : i32
    return %c0_i32, %c0_i32_0 : i32, i32
  }
  func.func @transform_2(%arg0: i32, %arg1: i32) -> (i32, i32) {
    %c1_i32 = arith.constant 1 : i32
    %0 = arith.muli %arg0, %c1_i32 : i32
    %1 = arith.addi %0, %arg1 : i32
    %c0_i32 = arith.constant 0 : i32
    %c0_i32_0 = arith.constant 0 : i32
    return %1, %c0_i32 : i32, i32
  }
  func.func @transform_3(%arg0: i32, %arg1: i32) -> (i32, i32, i32) {
    %c0_i32 = arith.constant 0 : i32
    %c0_i32_0 = arith.constant 0 : i32
    %c0_i32_1 = arith.constant 0 : i32
    return %arg0, %c0_i32, %c0_i32_0 : i32, i32, i32
  }
}

module attributes {stable_mosaic.version = 11 : i64} {
  func.func @kernel(%arg0: i32, %arg1: i32, %arg2: memref<128x128xbf16, #tpu.memory_space<vmem>>, %arg3: memref<128x128xbf16, #tpu.memory_space<vmem>>, %arg4: memref<1x2x128xf32, #tpu.memory_space<vmem>>) attributes {dimension_semantics = [#tpu.dimension_semantics<parallel>, #tpu.dimension_semantics<arbitrary>], iteration_bounds = array<i64: 2, 2>, scalar_prefetch = 0 : i64, scratch_operands = 0 : i64, tpu.core_type = #tpu.core_type<tc>, window_params = [{transform_indices = @transform_0, window_bounds = array<i64: 128, 128>}, {pipeline_mode = #tpu.pipeline_mode<synchronous>, transform_indices = @transform_1, window_bounds = array<i64: 128, 128>}, {transform_indices = @transform_2, window_bounds = array<i64: 1, 2, 128>}]} {
    %c0 = arith.constant 0 : index
    %c0_0 = arith.constant 0 : index
    %0 = vector.load %arg2[%c0, %c0_0] : memref<128x128xbf16, #tpu.memory_space<vmem>>, vector<128x128xbf16>
    %c0_1 = arith.constant 0 : index
    %c0_2 = arith.constant 0 : index
    %1 = vector.load %arg3[%c0_1, %c0_2] : memref<128x128xbf16, #tpu.memory_space<vmem>>, vector<128x128xbf16>
    %cst = arith.constant dense<0.000000e+00> : vector<128x128xf32>
    %2 = tpu.matmul %0, %1, %cst {dimension_numbers = #tpu.dot_dimension_numbers<[1], [0], [0], [1], [0, 0, 1, 1], [], []>} : vector<128x128xbf16>, vector<128x128xbf16>, vector<128x128xf32> -> vector<128x128xf32>
    %c0_i32 = arith.constant 0 : i32
    %3 = arith.cmpi eq, %arg1, %c0_i32 : i32
    %4 = arith.extui %3 : i1 to i32
    %c0_i32_3 = arith.constant 0 : i32
    %5 = arith.cmpi ne, %4, %c0_i32_3 : i32
    scf.if %5 {
      %cst_12 = arith.constant 0.000000e+00 : f32
      %16 = vector.broadcast %cst_12 : f32 to vector<1x2x128xf32>
      %c0_13 = arith.constant 0 : index
      %c0_14 = arith.constant 0 : index
      %c0_15 = arith.constant 0 : index
      %17 = vector.load %arg4[%c0_13, %c0_14, %c0_15] : memref<1x2x128xf32, #tpu.memory_space<vmem>>, vector<1x2x128xf32>
      tpu.vector_store %arg4[%c0_13, %c0_14, %c0_15], %16 {strides = array<i32>} : memref<1x2x128xf32, #tpu.memory_space<vmem>>, vector<1x2x128xf32>,
    } else {
    }
    %cst_4 = arith.constant dense<0.000000e+00> : vector<128xf32>
    %6 = vector.multi_reduction <add>, %2, %cst_4 [0] : vector<128x128xf32> to vector<128xf32>
    %7 = vector.shape_cast %6 : vector<128xf32> to vector<1x128xf32>
    %8 = arith.mulf %2, %2 : vector<128x128xf32>
    %cst_5 = arith.constant dense<0.000000e+00> : vector<128xf32>
    %9 = vector.multi_reduction <add>, %8, %cst_5 [0] : vector<128x128xf32> to vector<128xf32>
    %10 = vector.shape_cast %9 : vector<128xf32> to vector<1x128xf32>
    %c0_6 = arith.constant 0 : index
    %c0_7 = arith.constant 0 : index
    %c0_8 = arith.constant 0 : index
    %11 = vector.load %arg4[%c0_6, %c0_7, %c0_8] : memref<1x2x128xf32, #tpu.memory_space<vmem>>, vector<1x2x128xf32>
    %12 = tpu.concatenate %7, %10 in 0 : vector<1x128xf32>, vector<1x128xf32> -> vector<2x128xf32>
    %13 = vector.shape_cast %12 : vector<2x128xf32> to vector<1x2x128xf32>
    %14 = arith.addf %11, %13 : vector<1x2x128xf32>
    %c0_9 = arith.constant 0 : index
    %c0_10 = arith.constant 0 : index
    %c0_11 = arith.constant 0 : index
    %15 = vector.load %arg4[%c0_9, %c0_10, %c0_11] : memref<1x2x128xf32, #tpu.memory_space<vmem>>, vector<1x2x128xf32>
    tpu.vector_store %arg4[%c0_9, %c0_10, %c0_11], %14 {strides = array<i32>} : memref<1x2x128xf32, #tpu.memory_space<vmem>>, vector<1x2x128xf32>,
    return
  }
  func.func @transform_0(%arg0: i32, %arg1: i32) -> (i32, i32) {
    %c2_i32 = arith.constant 2 : i32
    %0 = arith.muli %arg0, %c2_i32 : i32
    %1 = arith.addi %0, %arg1 : i32
    %c0_i32 = arith.constant 0 : i32
    %c0_i32_0 = arith.constant 0 : i32
    return %1, %c0_i32 : i32, i32
  }
  func.func @transform_1(%arg0: i32, %arg1: i32) -> (i32, i32) {
    %c0_i32 = arith.constant 0 : i32
    %c0_i32_0 = arith.constant 0 : i32
    %c0_i32_1 = arith.constant 0 : i32
    return %c0_i32, %c0_i32_0 : i32, i32
  }
  func.func @transform_2(%arg0: i32, %arg1: i32) -> (i32, i32, i32) {
    %c0_i32 = arith.constant 0 : i32
    %c0_i32_0 = arith.constant 0 : i32
    %c0_i32_1 = arith.constant 0 : i32
    return %arg0, %c0_i32, %c0_i32_0 : i32, i32, i32
  }
}

module attributes {stable_mosaic.version = 11 : i64} {
  func.func @_fused_decode_kernel(%arg0: i32, %arg1: memref<128x128xbf16, #tpu.memory_space<vmem>>, %arg2: memref<128x128xbf16, #tpu.memory_space<vmem>>, %arg3: memref<128x128xbf16, #tpu.memory_space<vmem>>, %arg4: memref<1x128xf32, #tpu.memory_space<vmem>>, %arg5: memref<1x128xf32, #tpu.memory_space<vmem>>, %arg6: memref<128x128xf32, #tpu.memory_space<vmem>>) attributes {dimension_semantics = [#tpu.dimension_semantics<parallel>], iteration_bounds = array<i64: 4>, scalar_prefetch = 0 : i64, scratch_operands = 0 : i64, tpu.core_type = #tpu.core_type<tc>, window_params = [{transform_indices = @transform_0, window_bounds = array<i64: 128, 128>}, {transform_indices = @transform_1, window_bounds = array<i64: 128, 128>}, {pipeline_mode = #tpu.pipeline_mode<synchronous>, transform_indices = @transform_2, window_bounds = array<i64: 128, 128>}, {pipeline_mode = #tpu.pipeline_mode<synchronous>, transform_indices = @transform_3, window_bounds = array<i64: 1, 128>}, {pipeline_mode = #tpu.pipeline_mode<synchronous>, transform_indices = @transform_4, window_bounds = array<i64: 1, 128>}, {transform_indices = @transform_5, window_bounds = array<i64: 128, 128>}]} {
    %c0 = arith.constant 0 : index
    %c0_0 = arith.constant 0 : index
    %0 = vector.load %arg1[%c0, %c0_0] : memref<128x128xbf16, #tpu.memory_space<vmem>>, vector<128x128xbf16>
    %c0_1 = arith.constant 0 : index
    %c0_2 = arith.constant 0 : index
    %1 = vector.load %arg3[%c0_1, %c0_2] : memref<128x128xbf16, #tpu.memory_space<vmem>>, vector<128x128xbf16>
    %cst = arith.constant dense<0.000000e+00> : vector<128x128xf32>
    %2 = tpu.matmul %0, %1, %cst {dimension_numbers = #tpu.dot_dimension_numbers<[1], [0], [0], [1], [0, 0, 1, 1], [], []>} : vector<128x128xbf16>, vector<128x128xbf16>, vector<128x128xf32> -> vector<128x128xf32>
    %c0_3 = arith.constant 0 : index
    %c0_4 = arith.constant 0 : index
    %3 = vector.load %arg4[%c0_3, %c0_4] : memref<1x128xf32, #tpu.memory_space<vmem>>, vector<1x128xf32>
    %4 = vector.broadcast %3 : vector<1x128xf32> to vector<128x128xf32>
    %5 = arith.mulf %2, %4 : vector<128x128xf32>
    %c0_5 = arith.constant 0 : index
    %c0_6 = arith.constant 0 : index
    %6 = vector.load %arg5[%c0_5, %c0_6] : memref<1x128xf32, #tpu.memory_space<vmem>>, vector<1x128xf32>
    %7 = vector.broadcast %6 : vector<1x128xf32> to vector<128x128xf32>
    %8 = arith.addf %5, %7 : vector<128x128xf32>
    %cst_7 = arith.constant 0.000000e+00 : f32
    %9 = vector.broadcast %cst_7 : f32 to vector<128x128xf32>
    %10 = arith.maximumf %8, %9 : vector<128x128xf32>
    %c0_8 = arith.constant 0 : index
    %c0_9 = arith.constant 0 : index
    %11 = vector.load %arg2[%c0_8, %c0_9] : memref<128x128xbf16, #tpu.memory_space<vmem>>, vector<128x128xbf16>
    %12 = arith.extf %11 : vector<128x128xbf16> to vector<128x128xf32>
    %13 = arith.addf %10, %12 : vector<128x128xf32>
    %c0_10 = arith.constant 0 : index
    %c0_11 = arith.constant 0 : index
    %14 = vector.load %arg6[%c0_10, %c0_11] : memref<128x128xf32, #tpu.memory_space<vmem>>, vector<128x128xf32>
    tpu.vector_store %arg6[%c0_10, %c0_11], %13 {strides = array<i32>} : memref<128x128xf32, #tpu.memory_space<vmem>>, vector<128x128xf32>,
    return
  }
  func.func @transform_0(%arg0: i32) -> (i32, i32) {
    %c0_i32 = arith.constant 0 : i32
    %c0_i32_0 = arith.constant 0 : i32
    return %arg0, %c0_i32 : i32, i32
  }
  func.func @transform_1(%arg0: i32) -> (i32, i32) {
    %c0_i32 = arith.constant 0 : i32
    %c0_i32_0 = arith.constant 0 : i32
    return %arg0, %c0_i32 : i32, i32
  }
  func.func @transform_2(%arg0: i32) -> (i32, i32) {
    %c0_i32 = arith.constant 0 : i32
    %c0_i32_0 = arith.constant 0 : i32
    %c0_i32_1 = arith.constant 0 : i32
    return %c0_i32, %c0_i32_0 : i32, i32
  }
  func.func @transform_3(%arg0: i32) -> (i32, i32) {
    %c0_i32 = arith.constant 0 : i32
    %c0_i32_0 = arith.constant 0 : i32
    %c0_i32_1 = arith.constant 0 : i32
    return %c0_i32, %c0_i32_0 : i32, i32
  }
  func.func @transform_4(%arg0: i32) -> (i32, i32) {
    %c0_i32 = arith.constant 0 : i32
    %c0_i32_0 = arith.constant 0 : i32
    %c0_i32_1 = arith.constant 0 : i32
    return %c0_i32, %c0_i32_0 : i32, i32
  }
  func.func @transform_5(%arg0: i32) -> (i32, i32) {
    %c0_i32 = arith.constant 0 : i32
    %c0_i32_0 = arith.constant 0 : i32
    return %arg0, %c0_i32 : i32, i32
  }
}

</mosaic_0001>

<bundles_post_ra>
// kernel: neg.2
= control target key start
LH: loop header
LB: loop body
LE: loop exit
PB: predicated region body
PF: predicated region fallthrough
CT: control target
= control target key end

     0   :  { %s1032_s0 = inlined_call_operand.vmem [shape: f32[512,128], index: 0, kind: input, shape index: {}]   ;;  %s1033_s1 = inlined_call_operand.vmem [shape: f32[512,128], index: 1, kind: output, shape index: {}]  }
   0x1   :  { %v2_v0 = vld [vmem:[%s1032_s0] sm:$0xff]  ;;  %v512_v1 = vld [vmem:[%s1032_s0 + $0x8] sm:$0xff]  ;;  %v514_v2 = vld [vmem:[%s1032_s0 + $0x10] sm:$0xff] }
   0x2   :  { %v5_v3 = vxor.u32 2147483648, %v2_v0  ;;  %v12_v4 = vxor.u32 2147483648, %v512_v1  ;;  %v20_v5 = vxor.u32 2147483648, %v514_v2  ;;  %v516_v6 = vld [vmem:[%s1032_s0 + $0x18] sm:$0xff]  ;;  %v518_v7 = vld [vmem:[%s1032_s0 + $0x20] sm:$0xff]  ;;  %v520_v8 = vld [vmem:[%s1032_s0 + $0x28] sm:$0xff] }
   0x3   :  { %v28_v9 = vxor.u32 2147483648, %v516_v6  ;;  %v36_v10 = vxor.u32 2147483648, %v518_v7  ;;  %v44_v11 = vxor.u32 2147483648, %v520_v8  ;;  %v522_v12 = vld [vmem:[%s1032_s0 + $0x30] sm:$0xff]  ;;  %v524_v13 = vld [vmem:[%s1032_s0 + $0x38] sm:$0xff]  ;;  %v526_v14 = vld [vmem:[%s1032_s0 + $0x40] sm:$0xff] }
   0x4   :  { %7 = vst [vmem:[%s1033_s1] sm:$0xff] %v5_v3  ;;  %513 = vst [vmem:[%s1033_s1 + $0x8] sm:$0xff] %v12_v4  ;;  %v52_v15 = vxor.u32 2147483648, %v522_v12  ;;  %v60_v16 = vxor.u32 2147483648, %v524_v13  ;;  %v68_v17 = vxor.u32 2147483648, %v526_v14  ;;  %v528_v18 = vld [vmem:[%s1032_s0 + $0x48] sm:$0xff]  ;;  %v530_v19 = vld [vmem:[%s1032_s0 + $0x50] sm:$0xff] }
   0x5   :  { %515 = vst [vmem:[%s1033_s1 + $0x10] sm:$0xff] %v20_v5  ;;  %v532_v20 = vld [vmem:[%s1032_s0 + $0x58] sm:$0xff]  ;;  %517 = vst [vmem:[%s1033_s1 + $0x18] sm:$0xff] %v28_v9  ;;  %v76_v21 = vxor.u32 2147483648, %v528_v18  ;;  %v84_v22 = vxor.u32 2147483648, %v530_v19  ;;  %v534_v24 = vld [vmem:[%s1032_s0 + $0x60] sm:$0xff] }
   0x6   :  { %519 = vst [vmem:[%s1033_s1 + $0x20] sm:$0xff] %v36_v10  ;;  %521 = vst [vmem:[%s1033_s1 + $0x28] sm:$0xff] %v44_v11  ;;  %v92_v23 = vxor.u32 2147483648, %v532_v20  ;;  %v536_v25 = vld [vmem:[%s1032_s0 + $0x68] sm:$0xff]  ;;  %v538_v26 = vld [vmem:[%s1032_s0 + $0x70] sm:$0xff]  ;;  %v100_v27 = vxor.u32 2147483648, %v534_v24 }
   0x7   :  { %523 = vst [vmem:[%s1033_s1 + $0x30] sm:$0xff] %v52_v15  ;;  %525 = vst [vmem:[%s1033_s1 + $0x38] sm:$0xff] %v60_v16  ;;  %v108_v28 = vxor.u32 2147483648, %v536_v25  ;;  %v116_v29 = vxor.u32 2147483648, %v538_v26  ;;  %v540_v30 = vld [vmem:[%s1032_s0 + $0x78] sm:$0xff]  ;;  %v542_v31 = vld [vmem:[%s1032_s0 + $0x80] sm:$0xff] }
   0x8   :  { %527 = vst [vmem:[%s1033_s1 + $0x40] sm:$0xff] %v68_v17  ;;  %v544_v32 = vld [vmem:[%s1032_s0 + $0x88] sm:$0xff]  ;;  %529 = vst [vmem:[%s1033_s1 + $0x48] sm:$0xff] %v76_v21  ;;  %v124_v33 = vxor.u32 2147483648, %v540_v30  ;;  %v132_v34 = vxor.u32 2147483648, %v542_v31  ;;  %v546_v36 = vld [vmem:[%s1032_s0 + $0x90] sm:$0xff] }
   0x9   :  { %531 = vst [vmem:[%s1033_s1 + $0x50] sm:$0xff] %v84_v22  ;;  %533 = vst [vmem:[%s1033_s1 + $0x58] sm:$0xff] %v92_v23  ;;  %v140_v35 = vxor.u32 2147483648, %v544_v32  ;;  %v548_v37 = vld [vmem:[%s1032_s0 + $0x98] sm:$0xff]  ;;  %v550_v38 = vld [vmem:[%s1032_s0 + $0xa0] sm:$0xff]  ;;  %v148_v39 = vxor.u32 2147483648, %v546_v36 }
   0xa   :  { %535 = vst [vmem:[%s1033_s1 + $0x60] sm:$0xff] %v100_v27  ;;  %537 = vst [vmem:[%s1033_s1 + $0x68] sm:$0xff] %v108_v28  ;;  %v156_v40 = vxor.u32 2147483648, %v548_v37  ;;  %v164_v41 = vxor.u32 2147483648, %v550_v38  ;;  %v552_v42 = vld [vmem:[%s1032_s0 + $0xa8] sm:$0xff]  ;;  %v554_v43 = vld [vmem:[%s1032_s0 + $0xb0] sm:$0xff] }
   0xb   :  { %539 = vst [vmem:[%s1033_s1 + $0x70] sm:$0xff] %v116_v29  ;;  %v556_v44 = vld [vmem:[%s1032_s0 + $0xb8] sm:$0xff]  ;;  %541 = vst [vmem:[%s1033_s1 + $0x78] sm:$0xff] %v124_v33  ;;  %v172_v45 = vxor.u32 2147483648, %v552_v42  ;;  %v180_v46 = vxor.u32 2147483648, %v554_v43  ;;  %v558_v48 = vld [vmem:[%s1032_s0 + $0xc0] sm:$0xff] }
   0xc   :  { %543 = vst [vmem:[%s1033_s1 + $0x80] sm:$0xff] %v132_v34  ;;  %545 = vst [vmem:[%s1033_s1 + $0x88] sm:$0xff] %v140_v35  ;;  %v188_v47 = vxor.u32 2147483648, %v556_v44  ;;  %v560_v49 = vld [vmem:[%s1032_s0 + $0xc8] sm:$0xff]  ;;  %v562_v50 = vld [vmem:[%s1032_s0 + $0xd0] sm:$0xff]  ;;  %v196_v51 = vxor.u32 2147483648, %v558_v48 }
   0xd   :  { %547 = vst [vmem:[%s1033_s1 + $0x90] sm:$0xff] %v148_v39  ;;  %549 = vst [vmem:[%s1033_s1 + $0x98] sm:$0xff] %v156_v40  ;;  %v204_v52 = vxor.u32 2147483648, %v560_v49  ;;  %v212_v53 = vxor.u32 2147483648, %v562_v50  ;;  %v564_v54 = vld [vmem:[%s1032_s0 + $0xd8] sm:$0xff]  ;;  %v566_v55 = vld [vmem:[%s1032_s0 + $0xe0] sm:$0xff] }
   0xe   :  { %551 = vst [vmem:[%s1033_s1 + $0xa0] sm:$0xff] %v164_v41  ;;  %v568_v56 = vld [vmem:[%s1032_s0 + $0xe8] sm:$0xff]  ;;  %553 = vst [vmem:[%s1033_s1 + $0xa8] sm:$0xff] %v172_v45  ;;  %v220_v57 = vxor.u32 2147483648, %v564_v54  ;;  %v228_v58 = vxor.u32 2147483648, %v566_v55  ;;  %v570_v60 = vld [vmem:[%s1032_s0 + $0xf0] sm:$0xff] }
   0xf   :  { %555 = vst [vmem:[%s1033_s1 + $0xb0] sm:$0xff] %v180_v46  ;;  %557 = vst [vmem:[%s1033_s1 + $0xb8] sm:$0xff] %v188_v47  ;;  %v236_v59 = vxor.u32 2147483648, %v568_v56  ;;  %v572_v61 = vld [vmem:[%s1032_s0 + $0xf8] sm:$0xff]  ;;  %v574_v62 = vld [vmem:[%s1032_s0 + $0x100] sm:$0xff]  ;;  %v244_v63 = vxor.u32 2147483648, %v570_v60 }
  0x10   :  { %559 = vst [vmem:[%s1033_s1 + $0xc0] sm:$0xff] %v196_v51  ;;  %561 = vst [vmem:[%s1033_s1 + $0xc8] sm:$0xff] %v204_v52  ;;  %v252_v0 = vxor.u32 2147483648, %v572_v61  ;;  %v260_v1 = vxor.u32 2147483648, %v574_v62  ;;  %v576_v2 = vld [vmem:[%s1032_s0 + $0x108] sm:$0xff]  ;;  %v578_v3 = vld [vmem:[%s1032_s0 + $0x110] sm:$0xff] }
  0x11   :  { %563 = vst [vmem:[%s1033_s1 + $0xd0] sm:$0xff] %v212_v53  ;;  %v580_v4 = vld [vmem:[%s1032_s0 + $0x118] sm:$0xff]  ;;  %565 = vst [vmem:[%s1033_s1 + $0xd8] sm:$0xff] %v220_v57  ;;  %v268_v5 = vxor.u32 2147483648, %v576_v2  ;;  %v276_v6 = vxor.u32 2147483648, %v578_v3  ;;  %v582_v8 = vld [vmem:[%s1032_s0 + $0x120] sm:$0xff] }
  0x12   :  { %567 = vst [vmem:[%s1033_s1 + $0xe0] sm:$0xff] %v228_v58  ;;  %569 = vst [vmem:[%s1033_s1 + $0xe8] sm:$0xff] %v236_v59  ;;  %v284_v7 = vxor.u32 2147483648, %v580_v4  ;;  %v584_v9 = vld [vmem:[%s1032_s0 + $0x128] sm:$0xff]  ;;  %v586_v10 = vld [vmem:[%s1032_s0 + $0x130] sm:$0xff]  ;;  %v292_v11 = vxor.u32 2147483648, %v582_v8 }
  0x13   :  { %571 = vst [vmem:[%s1033_s1 + $0xf0] sm:$0xff] %v244_v63  ;;  %573 = vst [vmem:[%s1033_s1 + $0xf8] sm:$0xff] %v252_v0  ;;  %v300_v12 = vxor.u32 2147483648, %v584_v9  ;;  %v308_v13 = vxor.u32 2147483648, %v586_v10  ;;  %v588_v14 = vld [vmem:[%s1032_s0 + $0x138] sm:$0xff]  ;;  %v590_v15 = vld [vmem:[%s1032_s0 + $0x140] sm:$0xff] }
  0x14   :  { %575 = vst [vmem:[%s1033_s1 + $0x100] sm:$0xff] %v260_v1  ;;  %v592_v16 = vld [vmem:[%s1032_s0 + $0x148] sm:$0xff]  ;;  %577 = vst [vmem:[%s1033_s1 + $0x108] sm:$0xff] %v268_v5  ;;  %v316_v17 = vxor.u32 2147483648, %v588_v14  ;;  %v324_v18 = vxor.u32 2147483648, %v590_v15  ;;  %v594_v20 = vld [vmem:[%s1032_s0 + $0x150] sm:$0xff] }
  0x15   :  { %579 = vst [vmem:[%s1033_s1 + $0x110] sm:$0xff] %v276_v6  ;;  %581 = vst [vmem:[%s1033_s1 + $0x118] sm:$0xff] %v284_v7  ;;  %v332_v19 = vxor.u32 2147483648, %v592_v16  ;;  %v596_v21 = vld [vmem:[%s1032_s0 + $0x158] sm:$0xff]  ;;  %v598_v22 = vld [vmem:[%s1032_s0 + $0x160] sm:$0xff]  ;;  %v340_v23 = vxor.u32 2147483648, %v594_v20 }
  0x16   :  { %583 = vst [vmem:[%s1033_s1 + $0x120] sm:$0xff] %v292_v11  ;;  %585 = vst [vmem:[%s1033_s1 + $0x128] sm:$0xff] %v300_v12  ;;  %v348_v24 = vxor.u32 2147483648, %v596_v21  ;;  %v356_v25 = vxor.u32 2147483648, %v598_v22  ;;  %v600_v26 = vld [vmem:[%s1032_s0 + $0x168] sm:$0xff]  ;;  %v602_v27 = vld [vmem:[%s1032_s0 + $0x170] sm:$0xff] }
  0x17   :  { %587 = vst [vmem:[%s1033_s1 + $0x130] sm:$0xff] %v308_v13  ;;  %v604_v28 = vld [vmem:[%s1032_s0 + $0x178] sm:$0xff]  ;;  %589 = vst [vmem:[%s1033_s1 + $0x138] sm:$0xff] %v316_v17  ;;  %v364_v29 = vxor.u32 2147483648, %v600_v26  ;;  %v372_v30 = vxor.u32 2147483648, %v602_v27  ;;  %v606_v32 = vld [vmem:[%s1032_s0 + $0x180] sm:$0xff] }
  0x18   :  { %591 = vst [vmem:[%s1033_s1 + $0x140] sm:$0xff] %v324_v18  ;;  %593 = vst [vmem:[%s1033_s1 + $0x148] sm:$0xff] %v332_v19  ;;  %v380_v31 = vxor.u32 2147483648, %v604_v28  ;;  %v608_v33 = vld [vmem:[%s1032_s0 + $0x188] sm:$0xff]  ;;  %v610_v34 = vld [vmem:[%s1032_s0 + $0x190] sm:$0xff]  ;;  %v388_v35 = vxor.u32 2147483648, %v606_v32 }
  0x19   :  { %595 = vst [vmem:[%s1033_s1 + $0x150] sm:$0xff] %v340_v23  ;;  %597 = vst [vmem:[%s1033_s1 + $0x158] sm:$0xff] %v348_v24  ;;  %v396_v36 = vxor.u32 2147483648, %v608_v33  ;;  %v404_v37 = vxor.u32 2147483648, %v610_v34  ;;  %v612_v38 = vld [vmem:[%s1032_s0 + $0x198] sm:$0xff]  ;;  %v614_v39 = vld [vmem:[%s1032_s0 + $0x1a0] sm:$0xff] }
  0x1a   :  { %599 = vst [vmem:[%s1033_s1 + $0x160] sm:$0xff] %v356_v25  ;;  %v616_v40 = vld [vmem:[%s1032_s0 + $0x1a8] sm:$0xff]  ;;  %601 = vst [vmem:[%s1033_s1 + $0x168] sm:$0xff] %v364_v29  ;;  %v412_v41 = vxor.u32 2147483648, %v612_v38  ;;  %v420_v42 = vxor.u32 2147483648, %v614_v39  ;;  %v618_v44 = vld [vmem:[%s1032_s0 + $0x1b0] sm:$0xff] }
  0x1b   :  { %603 = vst [vmem:[%s1033_s1 + $0x170] sm:$0xff] %v372_v30  ;;  %605 = vst [vmem:[%s1033_s1 + $0x178] sm:$0xff] %v380_v31  ;;  %v428_v43 = vxor.u32 2147483648, %v616_v40  ;;  %v620_v45 = vld [vmem:[%s1032_s0 + $0x1b8] sm:$0xff]  ;;  %v622_v46 = vld [vmem:[%s1032_s0 + $0x1c0] sm:$0xff]  ;;  %v436_v47 = vxor.u32 2147483648, %v618_v44 }
  0x1c   :  { %607 = vst [vmem:[%s1033_s1 + $0x180] sm:$0xff] %v388_v35  ;;  %609 = vst [vmem:[%s1033_s1 + $0x188] sm:$0xff] %v396_v36  ;;  %v444_v48 = vxor.u32 2147483648, %v620_v45  ;;  %v452_v49 = vxor.u32 2147483648, %v622_v46  ;;  %v624_v50 = vld [vmem:[%s1032_s0 + $0x1c8] sm:$0xff]  ;;  %v626_v51 = vld [vmem:[%s1032_s0 + $0x1d0] sm:$0xff] }
  0x1d   :  { %611 = vst [vmem:[%s1033_s1 + $0x190] sm:$0xff] %v404_v37  ;;  %v628_v52 = vld [vmem:[%s1032_s0 + $0x1d8] sm:$0xff]  ;;  %613 = vst [vmem:[%s1033_s1 + $0x198] sm:$0xff] %v412_v41  ;;  %v460_v53 = vxor.u32 2147483648, %v624_v50  ;;  %v468_v54 = vxor.u32 2147483648, %v626_v51  ;;  %v630_v56 = vld [vmem:[%s1032_s0 + $0x1e0] sm:$0xff] }
  0x1e   :  { %615 = vst [vmem:[%s1033_s1 + $0x1a0] sm:$0xff] %v420_v42  ;;  %617 = vst [vmem:[%s1033_s1 + $0x1a8] sm:$0xff] %v428_v43  ;;  %v476_v55 = vxor.u32 2147483648, %v628_v52  ;;  %v632_v57 = vld [vmem:[%s1032_s0 + $0x1e8] sm:$0xff]  ;;  %v634_v58 = vld [vmem:[%s1032_s0 + $0x1f0] sm:$0xff]  ;;  %v484_v59 = vxor.u32 2147483648, %v630_v56 }
  0x1f   :  { %619 = vst [vmem:[%s1033_s1 + $0x1b0] sm:$0xff] %v436_v47  ;;  %621 = vst [vmem:[%s1033_s1 + $0x1b8] sm:$0xff] %v444_v48  ;;  %v492_v60 = vxor.u32 2147483648, %v632_v57  ;;  %v500_v61 = vxor.u32 2147483648, %v634_v58  ;;  %v636_v62 = vld [vmem:[%s1032_s0 + $0x1f8] sm:$0xff] }
  0x20   :  { %623 = vst [vmem:[%s1033_s1 + $0x1c0] sm:$0xff] %v452_v49  ;;  %625 = vst [vmem:[%s1033_s1 + $0x1c8] sm:$0xff] %v460_v53  ;;  %v508_v63 = vxor.u32 2147483648, %v636_v62 }
  0x21   :  { %627 = vst [vmem:[%s1033_s1 + $0x1d0] sm:$0xff] %v468_v54  ;;  %629 = vst [vmem:[%s1033_s1 + $0x1d8] sm:$0xff] %v476_v55 }
  0x22   :  { %631 = vst [vmem:[%s1033_s1 + $0x1e0] sm:$0xff] %v484_v59  ;;  %633 = vst [vmem:[%s1033_s1 + $0x1e8] sm:$0xff] %v492_v60 }
  0x23   :  { %635 = vst [vmem:[%s1033_s1 + $0x1f0] sm:$0xff] %v500_v61  ;;  %637 = vst [vmem:[%s1033_s1 + $0x1f8] sm:$0xff] %v508_v63 }

// kernel: transition_up.3
= control target key start
LH: loop header
LB: loop body
LE: loop exit
PB: predicated region body
PF: predicated region fallthrough
CT: control target
= control target key end

     0   :  { %vm138_vm0 = vcmask 523264   ;;  %v457_v12 = vmov 0.0   ;;  %vm340_vm1 = vcmask 1040384   ;;  %s579_s1 = inlined_call_operand.vmem [shape: bf16[64,128], index: 1, kind: input, shape index: {}]   ;;  %s580_s0 = inlined_call_operand.vmem [shape: bf16[128,64], index: 0, kind: input, shape index: {}]   ;;  %s581_s3 = inlined_call_operand.vmem [shape: f32[1,2,128], index: 3, kind: output, shape index: {1}]   ;;  %s582_s2 = inlined_call_operand.vmem [shape: f32[128,128], index: 2, kind: output, shape index: {0}]  }
   0x1   :  { %v445_v0 = vld [vmem:[%s579_s1 + $0x18] sm:$0xff]   ;;  %v446_v1 = vld [vmem:[%s579_s1 + $0x10] sm:$0xff]   ;;  %v447_v2 = vld [vmem:[%s579_s1 + $0x8] sm:$0xff]   ;;  %280 = vst [vmem:[%s581_s3] sm:$0x3] %v457_v12 }
   0x2   :  { %412 = vmatprep.subr.bf16.mxu0 %v445_v0  ;;  %436 = vmatprep.subr.bf16.mxu1 %v445_v0  ;;  %v449_v3 = vld [vmem:[%s580_s0] sm:$0xff]   ;;  %v450_v6 = vld [vmem:[%s580_s0 + $0x8] sm:$0xff]   ;;  %v451_v8 = vld [vmem:[%s580_s0 + $0x10] sm:$0xff]  }
   0x3   :  { %413 = vmatpush3.bf16.msra.mxu0 %v445_v0  ;;  %440 = vmatpush3.bf16.msra.mxu1 %v445_v0  ;;  %v448_v4 = vld [vmem:[%s579_s1] sm:$0xff]   ;;  %v454_v7 = vld [vmem:[%s580_s0 + $0x28] sm:$0xff]   ;;  %v455_v9 = vld [vmem:[%s580_s0 + $0x30] sm:$0xff]  }
   0x4   :  { %414 = vmatprep.subr.bf16.mxu0 %v446_v1  ;;  %437 = vmatprep.subr.bf16.mxu1 %v446_v1  ;;  %v453_v5 = vld [vmem:[%s580_s0 + $0x20] sm:$0xff]   ;;  %v452_v10 = vld [vmem:[%s580_s0 + $0x18] sm:$0xff]  }
   0x5   :  { %420 = vmatprep.mubr.msk.bf16.mxu0 %vm138_vm0, %v449_v3  ;;  %428 = vmatprep.mubr.msk.bf16.mxu1 %vm138_vm0, %v453_v5  ;;  %v456_v11 = vld [vmem:[%s580_s0 + $0x38] sm:$0xff]  }
   0x7   :  { %415 = vmatpush3.bf16.msra.mxu0 %v446_v1  ;;  %441 = vmatpush3.bf16.msra.mxu1 %v446_v1 }
   0x8   :  { %416 = vmatprep.subr.bf16.mxu0 %v447_v2  ;;  %438 = vmatprep.subr.bf16.mxu1 %v447_v2 }
   0xb   :  { %417 = vmatpush3.bf16.msra.mxu0 %v447_v2  ;;  %442 = vmatpush3.bf16.msra.mxu1 %v447_v2 }
   0xc   :  { %418 = vmatprep.subr.bf16.mxu0 %v448_v4  ;;  %439 = vmatprep.subr.bf16.mxu1 %v448_v4 }
   0xf   :  { %419 = vmatpush3.bf16.msra.mxu0 %v448_v4  ;;  %443 = vmatpush3.bf16.msra.mxu1 %v448_v4 }
  0x12   :  { %421 = vmatmul.mubr.msk.bf16.vlgmr.msra.gmra.mxu0 %vm138_vm0, %v450_v6  ;;  %429 = vmatmul.mubr.msk.bf16.vlgmr.msra.gmra.mxu1 %vm138_vm0, %v454_v7 }
  0x13   :  { %424 = vmatprep.mubr.msk.bf16.mxu0 %vm138_vm0, %v451_v8  ;;  %432 = vmatprep.mubr.msk.bf16.mxu1 %vm138_vm0, %v455_v9 }
  0x1a   :  { %425 = vmatmul.mubr.msk.bf16.gmra.mxu0 %vm138_vm0, %v452_v10  ;;  %433 = vmatmul.mubr.msk.bf16.gmra.mxu1 %vm138_vm0, %v456_v11 }
  0xd2   :  { %v422_v13 = vpop.f32.mrf.mxu0  ;;  %v430_v14 = vpop.f32.mrf.mxu1 }
  0xd3   :  { %262 = vst [vmem:[%s582_s2 + $0x10] sm:$0xff] %v422_v13  ;;  %270 = vst [vmem:[%s582_s2 + $0x50] sm:$0xff] %v430_v14  ;;  %v304_v26 = vmul.f32 %v422_v13, %v422_v13  ;;  %v312_v56 = vmul.f32 %v430_v14, %v430_v14 }
  0xd4   :  { %v197_v15 = vpop.f32.mrf.mxu0  ;;  %v229_v16 = vpop.f32.mrf.mxu1 }
  0xd5   :  { %260 = vst [vmem:[%s582_s2] sm:$0xff] %v197_v15  ;;  %268 = vst [vmem:[%s582_s2 + $0x40] sm:$0xff] %v229_v16  ;;  %v302_v21 = vmul.f32 %v197_v15, %v197_v15  ;;  %v310_v50 = vmul.f32 %v229_v16, %v229_v16 }
  0xd6   :  { %v423_v17 = vpop.f32.mrf.mxu0  ;;  %v431_v18 = vpop.f32.mrf.mxu1 }
  0xd7   :  { %263 = vst [vmem:[%s582_s2 + $0x18] sm:$0xff] %v423_v17  ;;  %271 = vst [vmem:[%s582_s2 + $0x58] sm:$0xff] %v431_v18  ;;  %v305_v31 = vmul.f32 %v423_v17, %v423_v17  ;;  %v313_v59 = vmul.f32 %v431_v18, %v431_v18 }
  0xd8   :  { %v200_v19 = vpop.f32.mrf.mxu0  ;;  %v232_v20 = vpop.f32.mrf.mxu1 }
  0xd9   :  { %261 = vst [vmem:[%s582_s2 + $0x8] sm:$0xff] %v200_v19  ;;  %v281_v22 = vadd.f32 %v200_v19, %v197_v15  ;;  %v303_v23 = vmul.f32 %v200_v19, %v200_v19  ;;  %269 = vst [vmem:[%s582_s2 + $0x48] sm:$0xff] %v232_v20  ;;  %v311_v54 = vmul.f32 %v232_v20, %v232_v20 }
  0xda   :  { %v426_v24 = vpop.f32.mrf.mxu0  ;;  %v434_v25 = vpop.f32.mrf.mxu1 }
  0xdb   :  { %v282_v27 = vadd.f32 %v422_v13, %v281_v22  ;;  %v318_v28 = vadd.f32 %v303_v23, %v302_v21  ;;  %266 = vst [vmem:[%s582_s2 + $0x30] sm:$0xff] %v426_v24  ;;  %274 = vst [vmem:[%s582_s2 + $0x70] sm:$0xff] %v434_v25  ;;  %v308_v44 = vmul.f32 %v426_v24, %v426_v24  ;;  %v339_v23 = vld [vmem:[%s581_s3] sm:$0x3] }
  0xdc   :  { %v213_v29 = vpop.f32.mrf.mxu0  ;;  %v245_v30 = vpop.f32.mrf.mxu1  ;;  %v316_v4 = vmul.f32 %v434_v25, %v434_v25 }
  0xdd   :  { %v319_v32 = vadd.f32 %v318_v28, %v304_v26  ;;  %264 = vst [vmem:[%s582_s2 + $0x20] sm:$0xff] %v213_v29  ;;  %v283_v33 = vadd.f32 %v423_v17, %v282_v27  ;;  %272 = vst [vmem:[%s582_s2 + $0x60] sm:$0xff] %v245_v30  ;;  %v306_v37 = vmul.f32 %v213_v29, %v213_v29 }
  0xde   :  { %v427_v34 = vpop.f32.mrf.mxu0  ;;  %v435_v35 = vpop.f32.mrf.mxu1  ;;  %v314_v63 = vmul.f32 %v245_v30, %v245_v30 }
  0xdf   :  { %v284_v36 = vadd.f32 %v283_v33, %v213_v29  ;;  %v320_v38 = vadd.f32 %v319_v32, %v305_v31  ;;  %267 = vst [vmem:[%s582_s2 + $0x38] sm:$0xff] %v427_v34  ;;  %275 = vst [vmem:[%s582_s2 + $0x78] sm:$0xff] %v435_v35  ;;  %v309_v47 = vmul.f32 %v427_v34, %v427_v34 }
  0xe0   :  { %v216_v39 = vpop.f32.mrf.mxu0  ;;  %v248_v40 = vpop.f32.mrf.mxu1  ;;  %v317_v7 = vmul.f32 %v435_v35, %v435_v35 }
  0xe1   :  { %v321_v41 = vadd.f32 %v320_v38, %v306_v37  ;;  %265 = vst [vmem:[%s582_s2 + $0x28] sm:$0xff] %v216_v39  ;;  %v285_v42 = vadd.f32 %v284_v36, %v216_v39  ;;  %v307_v43 = vmul.f32 %v216_v39, %v216_v39  ;;  %273 = vst [vmem:[%s582_s2 + $0x68] sm:$0xff] %v248_v40 }
  0xe2   :  { %v315_v3 = vmul.f32 %v248_v40, %v248_v40 }
  0xe3   :  { %v286_v45 = vadd.f32 %v426_v24, %v285_v42  ;;  %v322_v46 = vadd.f32 %v321_v41, %v307_v43 }
  0xe5   :  { %v287_v48 = vadd.f32 %v427_v34, %v286_v45  ;;  %v323_v49 = vadd.f32 %v322_v46, %v308_v44 }
  0xe7   :  { %v324_v51 = vadd.f32 %v323_v49, %v309_v47  ;;  %v288_v52 = vadd.f32 %v287_v48, %v229_v16 }
  0xe9   :  { %v289_v53 = vadd.f32 %v288_v52, %v232_v20  ;;  %v325_v55 = vadd.f32 %v324_v51, %v310_v50 }
  0xeb   :  { %v290_v57 = vadd.f32 %v430_v14, %v289_v53  ;;  %v326_v58 = vadd.f32 %v325_v55, %v311_v54 }
  0xed   :  { %v327_v60 = vadd.f32 %v326_v58, %v312_v56  ;;  %v291_v61 = vadd.f32 %v431_v18, %v290_v57 }
  0xef   :  { %v292_v62 = vadd.f32 %v291_v61, %v245_v30  ;;  %v328_v0 = vadd.f32 %v327_v60, %v313_v59 }
  0xf1   :  { %v329_v1 = vadd.f32 %v328_v0, %v314_v63  ;;  %v293_v2 = vadd.f32 %v292_v62, %v248_v40 }
  0xf3   :  { %v294_v5 = vadd.f32 %v434_v25, %v293_v2  ;;  %v330_v6 = vadd.f32 %v329_v1, %v315_v3 }
  0xf5   :  { %v295_v8 = vadd.f32 %v435_v35, %v294_v5  ;;  %v331_v9 = vadd.f32 %v330_v6, %v316_v4 }
  0xf7   :  { %v296_v10 = vrot.slane %v295_v8, 4  ;;  %v332_v11 = vadd.f32 %v331_v9, %v317_v7 }
  0xf9   :  { %v297_v12 = vadd.f32 %v296_v10, %v295_v8  ;;  %v333_v13 = vrot.slane %v332_v11, 4 }
  0xfb   :  { %v298_v14 = vrot.slane %v297_v12, 2  ;;  %v334_v15 = vadd.f32 %v333_v13, %v332_v11 }
  0xfd   :  { %v299_v16 = vadd.f32 %v298_v14, %v297_v12  ;;  %v335_v17 = vrot.slane %v334_v15, 2 }
  0xff   :  { %v300_v18 = vrot.slane %v299_v16, 1  ;;  %v336_v19 = vadd.f32 %v335_v17, %v334_v15 }
 0x101   :  { %v337_v20 = vrot.slane %v336_v19, 1  ;;  %v301_v21 = vadd.f32 %v300_v18, %v299_v16 }
 0x103   :  { %v338_v22 = vadd.f32 %v337_v20, %v336_v19 }
 0x105   :  { %v341_v24 = vsel %vm340_vm1, %v301_v21, %v338_v22 }
 0x106   :  { %v342_v25 = vadd.f32 %v341_v24, %v339_v23 }
 0x108   :  { %343 = vst [vmem:[%s581_s3] sm:$0x3] %v342_v25 }

// kernel: transition_up.4
= control target key start
LH: loop header
LB: loop body
LE: loop exit
PB: predicated region body
PF: predicated region fallthrough
CT: control target
= control target key end

     0   :  { %s735_s9 = smov 0   ;;  %s737_s10 = smov 0   ;;  %s829_s0 = inlined_call_operand.vmem [shape: bf16[512,128], index: 0, kind: input, shape index: {}]   ;;  %s830_s1 = inlined_call_operand.vmem [shape: bf16[128,128], index: 1, kind: input, shape index: {}]   ;;  %s831_s2 = inlined_call_operand.vmem [shape: f32[2,2,128], index: 2, kind: output, shape index: {}]  }
   0x1   :  { %s739_s11 = smov 0   ;;  %s741_s12 = smov 0  }
   0x2   :  { %s743_s13 = smov 0  }
   0x3 LB: > { %s21_s14 = sadd.s32 1, %s709_s11  ;;  %s24_s15 = sadd.s32 1, %s713_s12  ;;  %s717_s13 = sphi %s743_s13, %s12_s13   ;;  %s713_s12 = sphi %s741_s12, %s835_s12   ;;  %s709_s11 = sphi %s739_s11, %s834_s11   ;;  %s705_s10 = sphi %s737_s10, %s833_s10   ;;  %s701_s9 = sphi %s735_s9, %s832_s9  }
   0x4   : > { %p22_p0 = scmp.ge.s32.totalorder %s21_s14, 2  ;;  %p534_p1 = scmp.ge.s32.totalorder %s717_s13, 1 }
   0x5   : > { %p133_p2 = scmp.lt.s32.totalorder %s717_s13, 5 }
   0x6   : > { %s837_s14 = smov (%p22_p0, %s21_s14), 0  ;;  %s839_s15 = smov (!%p22_p0, %s24_s15), %s713_s12 }
   0x7   : > { %p134_p3 = pnand %p534_p1, %p133_p2  ;;  %p26_p4 = scmp.ge.s32.totalorder %s839_s15, 2 }
   0x8   : > { %p166_p5 = scmp.lt.s32.totalorder (!%p134_p3), %s705_s10, 1  ;;  %s535_s20 = sshll.u32 (!%p134_p3), %s705_s10, 1 }
   0x9   : > { %s841_s15 = smov (%p26_p4, %s839_s15), 0  ;;  %137 = sbr.rel (%p134_p3) target bundleno = 304 (0x130), region = 28 }
   0xa   : > { %s157_s21 = sadd.s32 (!%p134_p3), %s701_s9, %s535_s20  ;;  %p555_p7 = scmp.ne.s32.totalorder (!%p134_p3), %s701_s9, 0 }
   0xb   : > { %s536_s28 = sshll.u32 (!%p134_p3), %s157_s21, 4 }
   0xc   : > { %p159_p6 = scmp.lt.s32.totalorder (!%p134_p3), %s536_s28, 63 }
   0xe   : > { %v663_v0 = vld [vmem:[%s830_s1 + $0x38] sm:$0xff]   ;;  %v664_v1 = vld [vmem:[%s830_s1 + $0x30] sm:$0xff]   ;;  %s843_s10 = smov (!%p166_p5, %s705_s10), 1  ;;  %v665_v2 = vld [vmem:[%s830_s1 + $0x28] sm:$0xff]   ;;  %s845_s28 = smov (!%p159_p6, %s536_s28), 63 }
   0xf   : > { %574 = vmatprep.subr.bf16.mxu0 %v663_v0  ;;  %606 = vmatprep.subr.bf16.mxu1 %v663_v0  ;;  %s538_s22 = sshll.u32 %s843_s10, 1  ;;  %v666_v3 = vld [vmem:[%s830_s1 + $0x20] sm:$0xff]   ;;  %s537_s3 = sshll.u32 %s845_s28, 2  ;;  %v667_v4 = vld [vmem:[%s830_s1 + $0x18] sm:$0xff]   ;;  %v668_v7 = vld [vmem:[%s830_s1 + $0x10] sm:$0xff]  }
  0x10   : > { %575 = vmatpush3.bf16.msra.mxu0 %v663_v0  ;;  %614 = vmatpush3.bf16.msra.mxu1 %v663_v0  ;;  %s780_s27 = scalar_lea.vmem %s831_s2, %s538_s22  ;;  %s791_s8 = scalar_lea.vmem %s829_s0, %s537_s3  ;;  %v669_v8 = vld [vmem:[%s830_s1 + $0x8] sm:$0xff]   ;;  %v670_v9 = vld [vmem:[%s830_s1] sm:$0xff]  }
  0x11   : > { %576 = vmatprep.subr.bf16.mxu0 %v664_v1  ;;  %607 = vmatprep.subr.bf16.mxu1 %v664_v1  ;;  %v671_v5 = vld [vmem:[%s791_s8] sm:$0xff]   ;;  %v673_v10 = vld [vmem:[%s791_s8 + $0x8] sm:$0xff]   ;;  %v675_v12 = vld [vmem:[%s791_s8 + $0x10] sm:$0xff]  }
  0x12   : > { %v672_v6 = vld [vmem:[%s791_s8 + $0x20] sm:$0xff]   ;;  %590 = vmatprep.mubr.bf16.mxu0 %v671_v5  ;;  %v674_v11 = vld [vmem:[%s791_s8 + $0x28] sm:$0xff]   ;;  %v676_v13 = vld [vmem:[%s791_s8 + $0x30] sm:$0xff]  }
  0x13   : > { %598 = vmatprep.mubr.bf16.mxu1 %v672_v6  ;;  %v677_v14 = vld [vmem:[%s791_s8 + $0x18] sm:$0xff]  }
  0x14   : > { %577 = vmatpush3.bf16.msra.mxu0 %v664_v1  ;;  %615 = vmatpush3.bf16.msra.mxu1 %v664_v1  ;;  %v678_v15 = vld [vmem:[%s791_s8 + $0x38] sm:$0xff]  }
  0x15   : > { %578 = vmatprep.subr.bf16.mxu0 %v665_v2  ;;  %608 = vmatprep.subr.bf16.mxu1 %v665_v2 }
  0x18   : > { %579 = vmatpush3.bf16.msra.mxu0 %v665_v2  ;;  %616 = vmatpush3.bf16.msra.mxu1 %v665_v2 }
  0x19   : > { %580 = vmatprep.subr.bf16.mxu0 %v666_v3  ;;  %609 = vmatprep.subr.bf16.mxu1 %v666_v3 }
  0x1c   : > { %581 = vmatpush3.bf16.msra.mxu0 %v666_v3  ;;  %617 = vmatpush3.bf16.msra.mxu1 %v666_v3 }
  0x1d   : > { %582 = vmatprep.subr.bf16.mxu0 %v667_v4  ;;  %610 = vmatprep.subr.bf16.mxu1 %v667_v4 }
  0x20   : > { %583 = vmatpush3.bf16.msra.mxu0 %v667_v4  ;;  %618 = vmatpush3.bf16.msra.mxu1 %v667_v4 }
  0x21   : > { %584 = vmatprep.subr.bf16.mxu0 %v668_v7  ;;  %611 = vmatprep.subr.bf16.mxu1 %v668_v7 }
  0x24   : > { %585 = vmatpush3.bf16.msra.mxu0 %v668_v7  ;;  %619 = vmatpush3.bf16.msra.mxu1 %v668_v7 }
  0x25   : > { %586 = vmatprep.subr.bf16.mxu0 %v669_v8  ;;  %612 = vmatprep.subr.bf16.mxu1 %v669_v8 }
  0x28   : > { %587 = vmatpush3.bf16.msra.mxu0 %v669_v8  ;;  %620 = vmatpush3.bf16.msra.mxu1 %v669_v8 }
  0x29   : > { %588 = vmatprep.subr.bf16.mxu0 %v670_v9  ;;  %613 = vmatprep.subr.bf16.mxu1 %v670_v9 }
  0x2c   : > { %589 = vmatpush3.bf16.msra.mxu0 %v670_v9  ;;  %621 = vmatpush3.bf16.msra.mxu1 %v670_v9 }
  0x2f   : > { %591 = vmatmul.mubr.bf16.vlgmr.msra.gmra.mxu0 %v673_v10  ;;  %599 = vmatmul.mubr.bf16.vlgmr.msra.gmra.mxu1 %v674_v11 }
  0x30   : > { %594 = vmatprep.mubr.bf16.mxu0 %v675_v12  ;;  %602 = vmatprep.mubr.bf16.mxu1 %v676_v13 }
  0x37   : > { %595 = vmatmul.mubr.bf16.gmra.mxu0 %v677_v14  ;;  %603 = vmatmul.mubr.bf16.gmra.mxu1 %v678_v15 }
  0xef   : > { %v592_v16 = vpop.f32.mrf.mxu0  ;;  %v600_v17 = vpop.f32.mrf.mxu1 }
  0xf1   : > { %v333_v18 = vpop.f32.mrf.mxu0  ;;  %v365_v19 = vpop.f32.mrf.mxu1 }
  0xf3   : > { %v593_v20 = vpop.f32.mrf.mxu0  ;;  %v601_v21 = vpop.f32.mrf.mxu1 }
  0xf5   : > { %v336_v22 = vpop.f32.mrf.mxu0  ;;  %v368_v23 = vpop.f32.mrf.mxu1 }
  0xf7   : > { %v596_v24 = vpop.f32.mrf.mxu0  ;;  %v604_v25 = vpop.f32.mrf.mxu1 }
  0xf9   : > { %v349_v26 = vpop.f32.mrf.mxu0  ;;  %v381_v27 = vpop.f32.mrf.mxu1  ;;  %399 = sbr.rel (%p555_p7) target bundleno = 256 (0x100), region = 32 }
  0xfb   : > { %v597_v28 = vpop.f32.mrf.mxu0  ;;  %v605_v29 = vpop.f32.mrf.mxu1 }
  0xfd   : > { %v352_v30 = vpop.f32.mrf.mxu0  ;;  %v384_v31 = vpop.f32.mrf.mxu1 }
  0xfe   : > { %v719_v32 = vmov 0.0  }
  0xff   : > { %400 = vst [vmem:[%s780_s27] sm:$0x3] %v719_v32 }
 0x100 PF: > { %v401_v33 = vadd.f32 %v336_v22, %v333_v18  ;;  %v422_v34 = vmul.f32 %v333_v18, %v333_v18  ;;  %v423_v35 = vmul.f32 %v336_v22, %v336_v22  ;;  %v424_v37 = vmul.f32 %v592_v16, %v592_v16 }
 0x101   : > { %v425_v39 = vmul.f32 %v593_v20, %v593_v20  ;;  %v426_v42 = vmul.f32 %v349_v26, %v349_v26  ;;  %v427_v45 = vmul.f32 %v352_v30, %v352_v30  ;;  %v428_v48 = vmul.f32 %v596_v24, %v596_v24 }
 0x102   : > { %v402_v36 = vadd.f32 %v592_v16, %v401_v33  ;;  %v438_v40 = vadd.f32 %v423_v35, %v422_v34  ;;  %v429_v51 = vmul.f32 %v597_v28, %v597_v28  ;;  %v430_v54 = vmul.f32 %v365_v19, %v365_v19 }
 0x103   : > { %v431_v57 = vmul.f32 %v368_v23, %v368_v23  ;;  %v432_v60 = vmul.f32 %v600_v17, %v600_v17  ;;  %v433_v63 = vmul.f32 %v601_v21, %v601_v21  ;;  %v434_v2 = vmul.f32 %v381_v27, %v381_v27 }
 0x104   : > { %v403_v38 = vadd.f32 %v593_v20, %v402_v36  ;;  %v439_v43 = vadd.f32 %v438_v40, %v424_v37  ;;  %v435_v5 = vmul.f32 %v384_v31, %v384_v31  ;;  %v436_v8 = vmul.f32 %v604_v25, %v604_v25 }
 0x105   : > { %v437_v11 = vmul.f32 %v605_v29, %v605_v29  ;;  %vm460_vm0 = vcmask 1040384  }
 0x106   : > { %v404_v41 = vadd.f32 %v403_v38, %v349_v26  ;;  %v440_v46 = vadd.f32 %v439_v43, %v425_v39 }
 0x108   : > { %v405_v44 = vadd.f32 %v404_v41, %v352_v30  ;;  %v441_v49 = vadd.f32 %v440_v46, %v426_v42 }
 0x10a   : > { %v406_v47 = vadd.f32 %v596_v24, %v405_v44  ;;  %v442_v52 = vadd.f32 %v441_v49, %v427_v45 }
 0x10c   : > { %v407_v50 = vadd.f32 %v597_v28, %v406_v47  ;;  %v443_v55 = vadd.f32 %v442_v52, %v428_v48 }
 0x10e   : > { %v408_v53 = vadd.f32 %v407_v50, %v365_v19  ;;  %v444_v58 = vadd.f32 %v443_v55, %v429_v51 }
 0x110   : > { %v409_v56 = vadd.f32 %v408_v53, %v368_v23  ;;  %v445_v61 = vadd.f32 %v444_v58, %v430_v54 }
 0x112   : > { %v410_v59 = vadd.f32 %v600_v17, %v409_v56  ;;  %v446_v0 = vadd.f32 %v445_v61, %v431_v57 }
 0x114   : > { %v411_v62 = vadd.f32 %v601_v21, %v410_v59  ;;  %v447_v3 = vadd.f32 %v446_v0, %v432_v60 }
 0x116   : > { %v412_v1 = vadd.f32 %v411_v62, %v381_v27  ;;  %v448_v6 = vadd.f32 %v447_v3, %v433_v63  ;;  %v459_v27 = vld [vmem:[%s780_s27] sm:$0x3] }
 0x118   : > { %v413_v4 = vadd.f32 %v412_v1, %v384_v31  ;;  %v449_v9 = vadd.f32 %v448_v6, %v434_v2 }
 0x11a   : > { %v414_v7 = vadd.f32 %v604_v25, %v413_v4  ;;  %v450_v12 = vadd.f32 %v449_v9, %v435_v5 }
 0x11c   : > { %v415_v10 = vadd.f32 %v605_v29, %v414_v7  ;;  %v451_v14 = vadd.f32 %v450_v12, %v436_v8 }
 0x11e   : > { %v416_v13 = vrot.slane %v415_v10, 4  ;;  %v452_v16 = vadd.f32 %v451_v14, %v437_v11 }
 0x120   : > { %v417_v15 = vadd.f32 %v416_v13, %v415_v10  ;;  %v453_v18 = vrot.slane %v452_v16, 4 }
 0x122   : > { %v418_v17 = vrot.slane %v417_v15, 2  ;;  %v454_v20 = vadd.f32 %v453_v18, %v452_v16 }
 0x124   : > { %v419_v19 = vadd.f32 %v418_v17, %v417_v15  ;;  %v455_v22 = vrot.slane %v454_v20, 2 }
 0x126   : > { %v420_v21 = vrot.slane %v419_v19, 1  ;;  %v456_v23 = vadd.f32 %v455_v22, %v454_v20 }
 0x128   : > { %v421_v24 = vadd.f32 %v420_v21, %v419_v19  ;;  %v457_v26 = vrot.slane %v456_v23, 1 }
 0x12a   : > { %v458_v25 = vadd.f32 %v457_v26, %v456_v23 }
 0x12c   : > { %v461_v28 = vsel %vm460_vm0, %v421_v24, %v458_v25 }
 0x12d   : > { %v462_v29 = vadd.f32 %v461_v28, %v459_v27 }
 0x12f   : > { %463 = vst [vmem:[%s780_s27] sm:$0x3] %v462_v29 }
 0x130 PF: > { %s12_s13 = sadd.s32 1, %s717_s13   ;;  %s832_s9 = smov %s709_s11 }
 0x131   : > { %p9_p8 = scmp.ge.s32.totalorder %s12_s13, 6   ;;  %s833_s10 = smov %s713_s12 }
 0x132   : > { %s834_s11 = smov %s837_s14  ;;  %s835_s12 = smov %s841_s15 }
 0x133   :  { %11 = sbr.rel (!%p9_p8) target bundleno = 3 (0x3), region = 62 }

// kernel: transition_up.5
= control target key start
LH: loop header
LB: loop body
LE: loop exit
PB: predicated region body
PF: predicated region fallthrough
CT: control target
= control target key end

     0   :  { %10 = vsyncpa [#allocation3], 0  ;;  %s1233_s0 = inlined_call_operand.vmem [shape: bf16[512,128], index: 0, kind: input, shape index: {}]   ;;  %s1234_s1 = inlined_call_operand.vmem [shape: bf16[512,128], index: 1, kind: input, shape index: {}]   ;;  %s1235_s2 = inlined_call_operand.vmem [shape: bf16[128,128], index: 2, kind: input, shape index: {}]   ;;  %s1236_s3 = inlined_call_operand.vmem [shape: f32[1,128], index: 3, kind: input, shape index: {}]   ;;  %s1237_s4 = inlined_call_operand.vmem [shape: f32[1,128], index: 4, kind: input, shape index: {}]   ;;  %s1238_s5 = inlined_call_operand.hbm [shape: f32[512,128], index: 5, kind: output, shape index: {}]  }
   0x1   :  { %12 = vsyncpa [#allocation3 + $0x1], 0  ;;  %s976_s18 = smov 0   ;;  %s978_s19 = smov 0  }
   0x2   :  { %s980_s20 = smov 0   ;;  %s982_s21 = smov 0  }
   0x3 LB: > { %s997_s22 = sadd.s32 4294967295, %s941_s21   ;;  %s688_s23 = sadd.s32 4294967294, %s941_s21   ;;  %s941_s21 = sphi %s982_s21, %s1244_s21   ;;  %s937_s20 = sphi %s980_s20, %s1243_s20   ;;  %s933_s19 = sphi %s978_s19, %s1242_s19   ;;  %s929_s18 = sphi %s976_s18, %s1241_s18  }
   0x4   : > { %s1001_s24 = sadd.s32 1, %s941_s21   ;;  %s140_s25 = sadd.s32 1, %s937_s20 }
   0x5   : > { %s137_s26 = ssub.s32 %s941_s21, %s1001_s24  ;;  %p150_p0 = scmp.ne.s32.totalorder %s937_s20, %s933_s19 }
   0x6   : > { %p138_p1 = scmp.eq.s32.totalorder %s137_s26, 0  ;;  %p151_p2 = scmp.eq.s32.totalorder %s997_s22, 3 }
   0x7   : > { %p156_p3 = scmp.ne.s32.totalorder %s933_s19, %s929_s18  ;;  %p157_p4 = scmp.eq.s32.totalorder %s688_s23, 3 }
   0x8   : > { %s1012_s27 = scalar_select %p138_p1, %s937_s20, %s140_s25  }
   0x9   : > { %p1014_p5 = por %p151_p2, %p150_p0  ;;  %p1018_p6 = por %p157_p4, %p156_p3 }
   0xa   : > { %p691_p7 = scmp.ge.s32.totalorder %s941_s21, 1  ;;  %p202_p8 = scmp.lt.s32.totalorder %s941_s21, 5 }
   0xc   : > { %p203_p9 = pnand %p691_p7, %p202_p8 }
   0xd   : > { %s693_s7 = sshll.u32 (!%p203_p9), %s997_s22, 4  ;;  %s720_s26 = sshll.u32 (!%p203_p9), %s997_s22, 11 }
   0xe   : > { %206 = sbr.rel (%p203_p9) target bundleno = 283 (0x11b), region = 40  ;;  %p236_p10 = scmp.lt.s32.totalorder (!%p203_p9), %s693_s7, 63 }
   0xf   : > { %s1183_s9 = scalar_lea.hbm (!%p203_p9), %s1238_s5, %s720_s26  ;;  %s943_s11 = smov (!%p203_p9), [#allocation2]  }
  0x10   : > { %s885_s13 = sshll.u32 (!%p203_p9), %s943_s11, 4  ;;  %s886_s13 = int_to_ptr.vmem [resolvable:$false] %s885_s13 }
  0x13   : > { %v865_v0 = vld [vmem:[%s1235_s2 + $0x38] sm:$0xff]   ;;  %v866_v1 = vld [vmem:[%s1235_s2 + $0x30] sm:$0xff]   ;;  %s1246_s7 = smov (!%p236_p10, %s693_s7), 63  ;;  %v867_v2 = vld [vmem:[%s1235_s2 + $0x28] sm:$0xff]  }
  0x14   : > { %776 = vmatprep.subr.bf16.mxu0 %v865_v0  ;;  %808 = vmatprep.subr.bf16.mxu1 %v865_v0  ;;  %s694_s12 = sshll.u32 %s1246_s7, 2  ;;  %v868_v3 = vld [vmem:[%s1235_s2 + $0x20] sm:$0xff]   ;;  %v869_v6 = vld [vmem:[%s1235_s2 + $0x18] sm:$0xff]   ;;  %v870_v7 = vld [vmem:[%s1235_s2 + $0x10] sm:$0xff]  }
  0x15   : > { %777 = vmatpush3.bf16.msra.mxu0 %v865_v0  ;;  %816 = vmatpush3.bf16.msra.mxu1 %v865_v0  ;;  %s1042_s15 = scalar_lea.vmem %s1233_s0, %s694_s12  ;;  %v871_v8 = vld [vmem:[%s1235_s2 + $0x8] sm:$0xff]   ;;  %v872_v9 = vld [vmem:[%s1235_s2] sm:$0xff]   ;;  %s245_s14 = scalar_lea.vmem %s1234_s1, %s694_s12 }
  0x16   : > { %778 = vmatprep.subr.bf16.mxu0 %v866_v1  ;;  %809 = vmatprep.subr.bf16.mxu1 %v866_v1  ;;  %v873_v4 = vld [vmem:[%s1042_s15] sm:$0xff]   ;;  %v875_v10 = vld [vmem:[%s1042_s15 + $0x8] sm:$0xff]   ;;  %v877_v12 = vld [vmem:[%s1042_s15 + $0x10] sm:$0xff]  }
  0x17   : > { %v874_v5 = vld [vmem:[%s1042_s15 + $0x20] sm:$0xff]   ;;  %792 = vmatprep.mubr.bf16.mxu0 %v873_v4  ;;  %v876_v11 = vld [vmem:[%s1042_s15 + $0x28] sm:$0xff]   ;;  %v878_v13 = vld [vmem:[%s1042_s15 + $0x30] sm:$0xff]  }
  0x18   : > { %800 = vmatprep.mubr.bf16.mxu1 %v874_v5  ;;  %v879_v14 = vld [vmem:[%s1042_s15 + $0x18] sm:$0xff]   ;;  %v1072_v16 = vld [vmem:[%s245_s14 + $0x8] sm:$0xff]   ;;  %v1079_v18 = vld [vmem:[%s1236_s3] ss:$0 sm:$0xff] }
  0x19   : > { %779 = vmatpush3.bf16.msra.mxu0 %v866_v1  ;;  %817 = vmatpush3.bf16.msra.mxu1 %v866_v1  ;;  %v880_v15 = vld [vmem:[%s1042_s15 + $0x38] sm:$0xff]   ;;  %v1074_v17 = vld [vmem:[%s245_s14 + $0x28] sm:$0xff]   ;;  %v1081_v19 = vld [vmem:[%s245_s14] sm:$0xff]   ;;  %s232_s15 = sand.u32 1, %s933_s19   ;;  %v727_v23 = vunpack.c.l.bf16 %v1072_v16  ;;  %v728_v36 = vunpack.c.h.bf16 %v1072_v16 }
  0x1a   : > { %780 = vmatprep.subr.bf16.mxu0 %v867_v2  ;;  %810 = vmatprep.subr.bf16.mxu1 %v867_v2  ;;  %v1083_v20 = vld [vmem:[%s245_s14 + $0x20] sm:$0xff]   ;;  %v743_v25 = vunpack.c.l.bf16 %v1074_v17  ;;  %v1093_v26 = vld [vmem:[%s245_s14 + $0x18] sm:$0xff]   ;;  %v723_v29 = vunpack.c.l.bf16 %v1081_v19  ;;  %v1101_v32 = vld [vmem:[%s245_s14 + $0x10] sm:$0xff]   ;;  %v744_v37 = vunpack.c.h.bf16 %v1074_v17  ;;  %v724_v38 = vunpack.c.h.bf16 %v1081_v19  ;;  %s1111_s12 = sshll.u32 %s232_s15, 7  ;;  %s1193_s22 = scalar_lea.sflag [#allocation3], %s232_s15 }
  0x1b   : > { %v1089_v22 = vld [vmem:[%s1237_s4] ss:$0 sm:$0xff]  ;;  %v739_v30 = vunpack.c.l.bf16 %v1083_v20  ;;  %v1099_v31 = vld [vmem:[%s245_s14 + $0x38] sm:$0xff]   ;;  %v1103_v33 = vld [vmem:[%s245_s14 + $0x30] sm:$0xff]   ;;  %v740_v39 = vunpack.c.h.bf16 %v1083_v20  ;;  %v735_v46 = vunpack.c.l.bf16 %v1093_v26  ;;  %v731_v48 = vunpack.c.l.bf16 %v1101_v32  ;;  %s1132_s25 = scalar_lea.vmem [#allocation2], %s1111_s12  ;;  %s887_s14 = scalar_lea.vmem %s886_s13, 4096 }
  0x1c   : > { %v751_v47 = vunpack.c.l.bf16 %v1099_v31  ;;  %v747_v49 = vunpack.c.l.bf16 %v1103_v33  ;;  %v736_v58 = vunpack.c.h.bf16 %v1093_v26  ;;  %v752_v59 = vunpack.c.h.bf16 %v1099_v31  ;;  %s614_s30 = sshll.u32 %s1132_s25, 4  ;;  %s1185_s30 = int_to_ptr.vmem [resolvable:$true] %s614_s30 }
  0x1d   : > { %781 = vmatpush3.bf16.msra.mxu0 %v867_v2  ;;  %818 = vmatpush3.bf16.msra.mxu1 %v867_v2  ;;  %s881_s10 = scalar_lea.vmem %s1185_s30, 2048  ;;  %p888_p0 = scmp.lt.s32.totalorder %s1185_s30, %s886_s13 }
  0x1e   : > { %782 = vmatprep.subr.bf16.mxu0 %v868_v3  ;;  %811 = vmatprep.subr.bf16.mxu1 %v868_v3  ;;  %p882_p11 = scmp.ne.s32.totalorder %s1185_s30, %s881_s10  ;;  %p889_p1 = scmp.lt.s32.totalorder %s887_s14, %s881_s10 }
  0x20   : > { %p883_p12 = pnand %p882_p11, %p1014_p5  ;;  %p890_p2 = por %p889_p1, %p888_p0 }
  0x21   : > { %783 = vmatpush3.bf16.msra.mxu0 %v868_v3  ;;  %819 = vmatpush3.bf16.msra.mxu1 %v868_v3 }
  0x22   : > { %784 = vmatprep.subr.bf16.mxu0 %v869_v6  ;;  %812 = vmatprep.subr.bf16.mxu1 %v869_v6  ;;  %p884_p13 = pneg %p883_p12 }
  0x24   : > { %p891_p3 = pnand %p890_p2, %p884_p13 }
  0x25   : > { %785 = vmatpush3.bf16.msra.mxu0 %v869_v6  ;;  %820 = vmatpush3.bf16.msra.mxu1 %v869_v6 }
  0x26   : > { %786 = vmatprep.subr.bf16.mxu0 %v870_v7  ;;  %813 = vmatprep.subr.bf16.mxu1 %v870_v7 }
  0x29   : > { %787 = vmatpush3.bf16.msra.mxu0 %v870_v7  ;;  %821 = vmatpush3.bf16.msra.mxu1 %v870_v7 }
  0x2a   : > { %788 = vmatprep.subr.bf16.mxu0 %v871_v8  ;;  %814 = vmatprep.subr.bf16.mxu1 %v871_v8 }
  0x2d   : > { %789 = vmatpush3.bf16.msra.mxu0 %v871_v8  ;;  %822 = vmatpush3.bf16.msra.mxu1 %v871_v8 }
  0x2e   : > { %790 = vmatprep.subr.bf16.mxu0 %v872_v9  ;;  %815 = vmatprep.subr.bf16.mxu1 %v872_v9 }
  0x31   : > { %791 = vmatpush3.bf16.msra.mxu0 %v872_v9  ;;  %823 = vmatpush3.bf16.msra.mxu1 %v872_v9 }
  0x34   : > { %793 = vmatmul.mubr.bf16.vlgmr.msra.gmra.mxu0 %v875_v10  ;;  %801 = vmatmul.mubr.bf16.vlgmr.msra.gmra.mxu1 %v876_v11 }
  0x35   : > { %796 = vmatprep.mubr.bf16.mxu0 %v877_v12  ;;  %804 = vmatprep.mubr.bf16.mxu1 %v878_v13 }
  0x3c   : > { %797 = vmatmul.mubr.bf16.gmra.mxu0 %v879_v14  ;;  %805 = vmatmul.mubr.bf16.gmra.mxu1 %v880_v15 }
  0xf4   : > { %v794_v21 = vpop.f32.mrf.mxu0  ;;  %v802_v24 = vpop.f32.mrf.mxu1 }
  0xf5   : > { %v483_v27 = vmul.f32 %v794_v21, %v1079_v18  ;;  %v491_v28 = vmul.f32 %v802_v24, %v1079_v18 }
  0xf6   : > { %v411_v34 = vpop.f32.mrf.mxu0  ;;  %v443_v35 = vpop.f32.mrf.mxu1 }
  0xf7   : > { %v506_v40 = vadd.f32 %v1089_v22, %v483_v27  ;;  %v514_v41 = vadd.f32 %v1089_v22, %v491_v28  ;;  %v481_v42 = vmul.f32 %v1079_v18, %v411_v34  ;;  %v489_v43 = vmul.f32 %v1079_v18, %v443_v35 }
  0xf8   : > { %v795_v44 = vpop.f32.mrf.mxu0  ;;  %v803_v45 = vpop.f32.mrf.mxu1 }
  0xf9   : > { %v522_v50 = vmax.f32 %v506_v40, 0.0  ;;  %v530_v51 = vmax.f32 %v514_v41, 0.0  ;;  %v504_v52 = vadd.f32 %v1089_v22, %v481_v42  ;;  %v512_v53 = vadd.f32 %v1089_v22, %v489_v43 }
  0xfa   : > { %v484_v54 = vmul.f32 %v795_v44, %v1079_v18  ;;  %v492_v55 = vmul.f32 %v803_v45, %v1079_v18  ;;  %v414_v56 = vpop.f32.mrf.mxu0  ;;  %v446_v57 = vpop.f32.mrf.mxu1 }
  0xfb   : > { %v570_v60 = vadd.f32 %v727_v23, %v522_v50  ;;  %v578_v61 = vadd.f32 %v743_v25, %v530_v51  ;;  %v520_v62 = vmax.f32 %v504_v52, 0.0  ;;  %v528_v63 = vmax.f32 %v512_v53, 0.0 }
  0xfc   : > { %v507_v0 = vadd.f32 %v1089_v22, %v484_v54  ;;  %v515_v1 = vadd.f32 %v1089_v22, %v492_v55  ;;  %v482_v2 = vmul.f32 %v1079_v18, %v414_v56  ;;  %v490_v3 = vmul.f32 %v1079_v18, %v446_v57  ;;  %v798_v4 = vpop.f32.mrf.mxu0  ;;  %v806_v5 = vpop.f32.mrf.mxu1 }
  0xfd   : > { %586 = vst [vmem:[%s1132_s25 + $0x10] sm:$0xff] %v570_v60  ;;  %594 = vst [vmem:[%s1132_s25 + $0x50] sm:$0xff] %v578_v61  ;;  %v568_v6 = vadd.f32 %v723_v29, %v520_v62  ;;  %v576_v7 = vadd.f32 %v739_v30, %v528_v63  ;;  %v487_v8 = vmul.f32 %v798_v4, %v1079_v18  ;;  %v732_v54 = vunpack.c.h.bf16 %v1101_v32 }
  0xfe   : > { %v495_v9 = vmul.f32 %v806_v5, %v1079_v18  ;;  %v523_v10 = vmax.f32 %v507_v0, 0.0  ;;  %v531_v11 = vmax.f32 %v515_v1, 0.0  ;;  %v505_v12 = vadd.f32 %v1089_v22, %v482_v2  ;;  %v427_v14 = vpop.f32.mrf.mxu0  ;;  %v459_v15 = vpop.f32.mrf.mxu1 }
  0xff   : > { %v513_v13 = vadd.f32 %v1089_v22, %v490_v3  ;;  %584 = vst [vmem:[%s1132_s25] sm:$0xff] %v568_v6  ;;  %592 = vst [vmem:[%s1132_s25 + $0x40] sm:$0xff] %v576_v7  ;;  %v510_v16 = vadd.f32 %v1089_v22, %v487_v8  ;;  %v485_v21 = vmul.f32 %v1079_v18, %v427_v14  ;;  %v748_v55 = vunpack.c.h.bf16 %v1103_v33 }
 0x100   : > { %v518_v17 = vadd.f32 %v1089_v22, %v495_v9  ;;  %v493_v23 = vmul.f32 %v1079_v18, %v459_v15  ;;  %v571_v24 = vadd.f32 %v728_v36, %v523_v10  ;;  %v579_v25 = vadd.f32 %v744_v37, %v531_v11  ;;  %v799_v29 = vpop.f32.mrf.mxu0  ;;  %v807_v30 = vpop.f32.mrf.mxu1 }
 0x101   : > { %v521_v27 = vmax.f32 %v505_v12, 0.0  ;;  %v529_v28 = vmax.f32 %v513_v13, 0.0  ;;  %v526_v34 = vmax.f32 %v510_v16, 0.0  ;;  %v508_v40 = vadd.f32 %v1089_v22, %v485_v21 }
 0x102   : > { %v534_v35 = vmax.f32 %v518_v17, 0.0  ;;  %v516_v41 = vadd.f32 %v1089_v22, %v493_v23  ;;  %587 = vst [vmem:[%s1132_s25 + $0x18] sm:$0xff] %v571_v24  ;;  %595 = vst [vmem:[%s1132_s25 + $0x58] sm:$0xff] %v579_v25  ;;  %v488_v37 = vmul.f32 %v799_v29, %v1079_v18  ;;  %v496_v43 = vmul.f32 %v807_v30, %v1079_v18  ;;  %v430_v44 = vpop.f32.mrf.mxu0  ;;  %v462_v45 = vpop.f32.mrf.mxu1 }
 0x103   : > { %v569_v42 = vadd.f32 %v724_v38, %v521_v27  ;;  %v577_v36 = vadd.f32 %v740_v39, %v529_v28  ;;  %v574_v50 = vadd.f32 %v735_v46, %v526_v34  ;;  %v524_v52 = vmax.f32 %v508_v40, 0.0 }
 0x104   : > { %v582_v51 = vadd.f32 %v751_v47, %v534_v35  ;;  %v532_v53 = vmax.f32 %v516_v41, 0.0  ;;  %v511_v19 = vadd.f32 %v1089_v22, %v488_v37  ;;  %v519_v20 = vadd.f32 %v1089_v22, %v496_v43 }
 0x105   : > { %585 = vst [vmem:[%s1132_s25 + $0x8] sm:$0xff] %v569_v42  ;;  %593 = vst [vmem:[%s1132_s25 + $0x48] sm:$0xff] %v577_v36  ;;  %v486_v38 = vmul.f32 %v1079_v18, %v430_v44  ;;  %v494_v39 = vmul.f32 %v1079_v18, %v462_v45  ;;  %v572_v46 = vadd.f32 %v731_v48, %v524_v52 }
 0x106   : > { %590 = vst [vmem:[%s1132_s25 + $0x30] sm:$0xff] %v574_v50  ;;  %598 = vst [vmem:[%s1132_s25 + $0x70] sm:$0xff] %v582_v51  ;;  %v580_v47 = vadd.f32 %v747_v49, %v532_v53  ;;  %v527_v56 = vmax.f32 %v511_v19, 0.0  ;;  %v535_v57 = vmax.f32 %v519_v20, 0.0 }
 0x107   : > { %v509_v60 = vadd.f32 %v1089_v22, %v486_v38  ;;  %v517_v18 = vadd.f32 %v1089_v22, %v494_v39  ;;  %588 = vst [vmem:[%s1132_s25 + $0x20] sm:$0xff] %v572_v46 }
 0x108   : > { %596 = vst [vmem:[%s1132_s25 + $0x60] sm:$0xff] %v580_v47  ;;  %v575_v32 = vadd.f32 %v736_v58, %v527_v56  ;;  %v583_v33 = vadd.f32 %v752_v59, %v535_v57 }
 0x109   : > { %v525_v48 = vmax.f32 %v509_v60, 0.0  ;;  %v533_v49 = vmax.f32 %v517_v18, 0.0 }
 0x10a   : > { %591 = vst [vmem:[%s1132_s25 + $0x38] sm:$0xff] %v575_v32  ;;  %599 = vst [vmem:[%s1132_s25 + $0x78] sm:$0xff] %v583_v33 }
 0x10b   : > { %v573_v22 = vadd.f32 %v732_v54, %v525_v48  ;;  %v581_v26 = vadd.f32 %v748_v55, %v533_v49 }
 0x10d   : > { %589 = vst [vmem:[%s1132_s25 + $0x28] sm:$0xff] %v573_v22  ;;  %597 = vst [vmem:[%s1132_s25 + $0x68] sm:$0xff] %v581_v26 }
 0x10e   : > { %894 = shalt.err (!%p891_p3)
}
 0x10f   : > { %s895_s16 = scalar_lea.hbm %s1183_s9, 2048  ;;  %s899_s7 = scalar_lea.hbm %s1238_s5, 8192 }
 0x110   : > { %p896_p4 = scmp.ne.s32.totalorder %s1183_s9, %s895_s16  ;;  %p900_p9 = scmp.lt.s32.totalorder %s1183_s9, %s1238_s5 }
 0x111   : > { %p901_p10 = scmp.lt.s32.totalorder %s899_s7, %s895_s16 }
 0x112   : > { %p897_p7 = pnand %p896_p4, %p1014_p5 }
 0x113   : > { %p902_p11 = por %p901_p10, %p900_p9 }
 0x114   : > { %p898_p8 = pneg %p897_p7 }
 0x116   : > { %p903_p12 = pnand %p902_p11, %p898_p8 }
 0x118   : > { %906 = shalt.err (!%p903_p12)
}
 0x119   : > { %s944_s25 = smov 128   ;;  %s945_s26 = smov 8  }
 0x11a   : > { %824 = dma.vmem_to_hbm [thread:$0]  (%p1014_p5), %s1185_s30, 2048, %s1183_s9, %s1193_s22, %s944_s25, %s944_s25, %s945_s26  }
 0x11b PF: > { %p830_p13 = scmp.ge.s32.totalorder %s941_s21, 2  ;;  %s629_s6 = sand.u32 1, %s929_s18  }
 0x11c   : > { %s630_s8 = scalar_lea.sflag [#allocation3], %s629_s6 }
 0x11d   : > { %p827_p0 = pnand %p830_p13, %p1018_p6 }
 0x11f   : > { %p828_p1 = pneg %p827_p0 }
 0x121   : > { %924 = dma.done.wait (%p828_p1), %s630_s8, 2048  }
 0x122   : > { %926 = vsyncadd (%p828_p1), %s630_s8, 4294965248  ;;  %p15_p2 = scmp.ge.s32.totalorder %s1001_s24, 6   ;;  %s1241_s18 = smov %s933_s19 }
 0x123   : > { %s1242_s19 = smov %s937_s20  ;;  %s1243_s20 = smov %s1012_s27 }
 0x124   : > { %s1244_s21 = smov %s1001_s24  ;;  %17 = sbr.rel (!%p15_p2) target bundleno = 3 (0x3), region = 78 }
 0x129   :  { %635 = vsyncpa [#allocation3], 1 }
 0x12a   :  { %637 = vsyncpa [#allocation3 + $0x1], 1 }

</bundles_post_ra>
